<compile_context>
chip_gen: v6e
topology: v6e:2x2x1
jax: 0.10.0
libtpu: 0.0.40
codegen_flags: <defaults>
</compile_context>

<pallas_src>
import functools

import numpy as np

import jax
import jax.numpy as jnp
from jax.experimental import pallas as pl
from jax.experimental.pallas import tpu as pltpu


# --------------------------- parameter preparation ------------------------- #
def _fold_bn(b, gamma, beta, mean, var, eps=1e-5):
    scale = gamma / np.sqrt(var + eps)
    bias = (b - mean) * scale + beta
    return scale.astype(np.float32), bias.astype(np.float32)


def _banded_conv_mat(w, scale, w_in, w_out):
    """K-concatenated banded conv matrix  [kh * w_in * Cin, w_out * Cout].

    B[i*w_in*Cin + (wo+j)*Cin + c, wo*Cout + co] = scale[co] * w[co, c, i, j]
    so that  out[(n,ho), wo*Cout+co] = a_cat[(n,ho), :] @ B  is the valid conv,
    where a_cat lane-packs the 5 row-shifted activation slices along K.
    """
    c_out, c_in, kh, kw = w.shape
    wf = np.asarray(w, np.float32) * scale[:, None, None, None]
    mats = np.zeros((kh, w_in * c_in, w_out * c_out), np.float32)
    for i in range(kh):
        for wo in range(w_out):
            for j in range(kw):
                wc = wo + j
                mats[i, wc * c_in:(wc + 1) * c_in,
                     wo * c_out:(wo + 1) * c_out] = wf[:, :, i, j].T
    return mats.reshape(kh * w_in * c_in, w_out * c_out)


def _pool_row_sel(nb, h_in_stride, h_out_stride, n_pairs, dh, out_rows):
    """0/1 matrix: out row n*h_out_stride+hp <- in row n*h_in_stride + 2*hp + dh."""
    m = np.zeros((out_rows, nb * h_in_stride), np.float32)
    for n in range(nb):
        for hp in range(n_pairs):
            m[n * h_out_stride + hp, n * h_in_stride + 2 * hp + dh] = 1.0
    return m


def _pool_col_sel(n_pairs, c, w_in, dw):
    """0/1 matrix: out col block wp*c:+c <- in col block (2*wp+dw)*c:+c."""
    m = np.zeros((w_in * c, n_pairs * c), np.float32)
    for wp in range(n_pairs):
        s = (2 * wp + dw) * c
        m[s:s + c, wp * c:(wp + 1) * c] = np.eye(c, dtype=np.float32)
    return m


def prepare_params(p, num_classes=10, batch_block=8, eps=1e-5):
    """Fold BN, K-pack / band / pad weights once (done outside the fwd pass).

    batch_block = images per grid step (<= 8); any batch size is handled by the
    wrapper via padding to a multiple of batch_block.
    """
    NB = int(batch_block)
    assert 1 <= NB <= 8, "batch_block must be in [1, 8]"
    assert num_classes <= 128
    npf = lambda a: np.asarray(a, np.float32)
    bf16 = jnp.bfloat16

    s1, bias1 = _fold_bn(npf(p["b1"]), *map(npf, p["bn1"]), eps=eps)
    s2, bias2 = _fold_bn(npf(p["b2"]), *map(npf, p["bn2"]), eps=eps)
    s3, bias3 = _fold_bn(npf(p["b3"]), *map(npf, p["bn3"]), eps=eps)

    prep = {"nb": NB}

    # conv1: 32x32x1 -> 28x28x6   (single K=160 matmul)
    prep["b1"] = jnp.asarray(_banded_conv_mat(npf(p["w1"]), s1, 32, 28))      # [160,168]
    prep["bias1"] = jnp.asarray(np.tile(bias1, 28)[None, :])                  # [1,168]
    r1 = 16 * NB + 8
    prep["rs1"] = jnp.asarray(np.stack(
        [_pool_row_sel(NB, 32, 16, 14, dh, r1) for dh in (0, 1)]), dtype=bf16)  # [2,r1,32NB]
    prep["cs1"] = jnp.asarray(np.stack(
        [_pool_col_sel(14, 6, 28, dw) for dw in (0, 1)]), dtype=bf16)           # [2,168,84]

    # conv2: 14x14x6 -> 10x10x16  (single K=420 matmul, shifts lane-packed in-kernel)
    prep["b2"] = jnp.asarray(_banded_conv_mat(npf(p["w2"]), s2, 14, 10))      # [420,160]
    prep["bias2"] = jnp.asarray(np.tile(bias2, 10)[None, :])                  # [1,160]
    r2 = ((5 * NB + 4 + 7) // 8) * 8
    prep["rs2"] = jnp.asarray(np.stack(
        [_pool_row_sel(NB, 16, 5, 5, dh, r2) for dh in (0, 1)]), dtype=bf16)   # [2,r2,16NB]
    prep["cs2"] = jnp.asarray(np.stack(
        [_pool_col_sel(5, 16, 10, dw) for dw in (0, 1)]), dtype=bf16)          # [2,160,80]

    # conv3: 5x5x16 -> 1x1x120 == dense matmul on the lane-packed (i, j, c) patch
    w3f = npf(p["w3"]) * s3[:, None, None, None]
    prep["w3"] = jnp.asarray(np.transpose(w3f, (2, 3, 1, 0)).reshape(400, 120))  # [400,120]
    prep["bias3"] = jnp.asarray(bias3[None, :])                               # [1,120]
    sel3 = np.zeros((8, 5 * NB), np.float32)                                  # row compaction
    for n in range(NB):
        sel3[n, 5 * n] = 1.0
    prep["sel3"] = jnp.asarray(sel3, dtype=bf16)                              # [8,5NB]

    # fc1 / fc2 (fc2 padded to 128 lanes for a dense (8,128) output store)
    prep["wf1"] = jnp.asarray(npf(p["wf1"]).T)                                # [120,84]
    prep["bf1"] = jnp.asarray(npf(p["bf1"])[None, :])                         # [1,84]
    wf2p = np.zeros((84, 128), np.float32)
    wf2p[:, :num_classes] = npf(p["wf2"]).T
    bf2p = np.zeros((1, 128), np.float32)
    bf2p[0, :num_classes] = npf(p["bf2"])
    prep["wf2"] = jnp.asarray(wf2p)                                           # [84,128]
    prep["bf2"] = jnp.asarray(bf2p)                                           # [1,128]
    return prep


# ------------------------------ fused kernel ------------------------------- #
def _lenet5_kernel(a0_ref, b1_ref, bias1_ref, rs1_ref, cs1_ref,
                   b2_ref, bias2_ref, rs2_ref, cs2_ref,
                   w3_ref, bias3_ref, sel3_ref, wf1_ref, bf1_ref,
                   wf2_ref, bf2_ref, out_ref, *, nb):
    f32 = jnp.float32
    dot = functools.partial(jnp.dot, preferred_element_type=f32)

    # conv1 + BN1(folded) + ReLU : one K=160 matmul (shifts pre-packed in wrapper)
    a1 = jnp.maximum(dot(a0_ref[...], b1_ref[...]) + bias1_ref[...], 0.0)    # [32NB,168]

    # maxpool 2x2/2 via 0/1 selection matmuls (bf16-stored, exact)
    rmax1 = jnp.maximum(dot(rs1_ref[0].astype(f32), a1),
                        dot(rs1_ref[1].astype(f32), a1))                     # [16NB+8,168]
    a1p = jnp.maximum(dot(rmax1, cs1_ref[0].astype(f32)),
                      dot(rmax1, cs1_ref[1].astype(f32)))                    # [16NB+8,84]

    # conv2 + BN2 + ReLU : lane-pack the 5 row shifts -> one K=420 matmul
    r2rows = 16 * nb
    a1cat = jnp.concatenate([a1p[i:i + r2rows, :] for i in range(5)], axis=1)  # [16NB,420]
    a2 = jnp.maximum(dot(a1cat, b2_ref[...]) + bias2_ref[...], 0.0)            # [16NB,160]

    # maxpool 2x2/2, dense per-image output row stride of 5 (feeds conv3 directly)
    rmax2 = jnp.maximum(dot(rs2_ref[0].astype(f32), a2),
                        dot(rs2_ref[1].astype(f32), a2))                     # [r2p,160]
    a2p = jnp.maximum(dot(rmax2, cs2_ref[0].astype(f32)),
                      dot(rmax2, cs2_ref[1].astype(f32)))                    # [r2p,80]

    # conv3 (5x5 kernel over the 5x5 map): lane-pack 5 row shifts -> K=400 matmul
    r3rows = 5 * nb
    a2cat = jnp.concatenate([a2p[i:i + r3rows, :] for i in range(5)], axis=1)  # [5NB,400]
    acc3 = dot(a2cat, w3_ref[...])                                             # [5NB,120]
    # compact the valid rows (stride 5) into a dense [8,120] block, + BN3 + ReLU
    h = jnp.maximum(dot(sel3_ref[...].astype(f32), acc3) + bias3_ref[...], 0.0)  # [8,120]

    # fc1 + ReLU, fc2 (classes lane-padded to 128 -> dense (8,128) store)
    h = jnp.maximum(dot(h, wf1_ref[...]) + bf1_ref[...], 0.0)                # [8,84]
    out_ref[...] = dot(h, wf2_ref[...]) + bf2_ref[...]                       # [8,128]


def _cost_estimate(nb, ntiles):
    r1 = 16 * nb + 8
    r2 = ((5 * nb + 4 + 7) // 8) * 8
    per_tile_flops = 2 * (
        32 * nb * 160 * 168                                   # conv1
        + 2 * r1 * 32 * nb * 168 + 2 * r1 * 168 * 84          # pool1
        + 16 * nb * 420 * 160                                 # conv2
        + 2 * r2 * 16 * nb * 160 + 2 * r2 * 160 * 80          # pool2
        + 5 * nb * 400 * 120 + 8 * 5 * nb * 120               # conv3 + compaction
        + 8 * 120 * 84 + 8 * 84 * 128)                        # fc1, fc2
    weight_bytes = (4 * (160 * 168 + 168 + 420 * 160 + 160 + 400 * 120 + 120
                         + 120 * 84 + 84 + 84 * 128 + 128)
                    + 2 * (2 * r1 * 32 * nb + 2 * 168 * 84
                           + 2 * r2 * 16 * nb + 2 * 160 * 80 + 8 * 5 * nb))
    act_bytes = ntiles * 4 * (32 * nb * 160 + 8 * 128)
    return pl.CostEstimate(flops=ntiles * per_tile_flops, transcendentals=0,
                           bytes_accessed=weight_bytes + act_bytes)


@functools.partial(jax.jit, static_argnames=("nb", "num_classes"))
def _forward_impl(x, w, *, nb, num_classes):
    N = x.shape[0]
    ntiles = -(-N // nb)
    n_pad = ntiles * nb

    # 2D activation layout: rows = (n, h) with stride 32, cols = w; then lane-pack
    # the 5 conv1 kernel-row shifts:  a0[r, i*32 + w] = x_rows[r + i, w].
    x2 = x.astype(jnp.float32).reshape(N * 32, 32)
    xr = jnp.pad(x2, ((0, (n_pad - N) * 32 + 4), (0, 0)))
    rows = n_pad * 32
    a0 = jnp.concatenate([xr[i:i + rows, :] for i in range(5)], axis=1)      # [32*n_pad,160]

    def const_spec(arr):
        return pl.BlockSpec(arr.shape, lambda b, _nd=arr.ndim: (0,) * _nd)

    in_specs = [
        pl.BlockSpec((32 * nb, 160), lambda b: (b, 0)),
        const_spec(w["b1"]), const_spec(w["bias1"]),
        const_spec(w["rs1"]), const_spec(w["cs1"]),
        const_spec(w["b2"]), const_spec(w["bias2"]),
        const_spec(w["rs2"]), const_spec(w["cs2"]),
        const_spec(w["w3"]), const_spec(w["bias3"]), const_spec(w["sel3"]),
        const_spec(w["wf1"]), const_spec(w["bf1"]),
        const_spec(w["wf2"]), const_spec(w["bf2"]),
    ]
    out_spec = pl.BlockSpec((8, 128), lambda b: (b, 0))

    out = pl.pallas_call(
        functools.partial(_lenet5_kernel, nb=nb),
        out_shape=jax.ShapeDtypeStruct((ntiles * 8, 128), jnp.float32),
        grid=(ntiles,),
        in_specs=in_specs,
        out_specs=out_spec,
        cost_estimate=_cost_estimate(nb, ntiles),
        compiler_params=pltpu.CompilerParams(
            dimension_semantics=("parallel",),            # shards over v7x's 2 TCs
            vmem_limit_bytes=32 * 1024 * 1024),
    )(a0, w["b1"], w["bias1"], w["rs1"], w["cs1"],
      w["b2"], w["bias2"], w["rs2"], w["cs2"],
      w["w3"], w["bias3"], w["sel3"], w["wf1"], w["bf1"],
      w["wf2"], w["bf2"])

    out = out.reshape(ntiles, 8, 128)[:, :nb, :].reshape(ntiles * nb, 128)
    return out[:N, :num_classes]


def lenet5_forward(x, prep, *, num_classes=10):
    """x: [N, 1, 32, 32] float32 -> logits [N, num_classes]."""
    assert x.ndim == 4 and x.shape[1:] == (1, 32, 32), x.shape
    nb = prep["nb"]                                   # static python int
    w = {k: v for k, v in prep.items() if k != "nb"}
    return _forward_impl(x, w, nb=nb, num_classes=num_classes)


# ------------------------------ parameters --------------------------------- #
def init_params(key, num_classes=10):
    ks = jax.random.split(key, 16)
    p = {}
    p["w1"] = 0.1 * jax.random.normal(ks[0], (6, 1, 5, 5), jnp.float32)
    p["b1"] = 0.1 * jax.random.normal(ks[1], (6,), jnp.float32)
    p["bn1"] = (1.0 + 0.1 * jax.random.normal(ks[2], (6,)),            # gamma
                0.1 * jax.random.normal(ks[3], (6,)),                  # beta
                0.1 * jax.random.normal(ks[4], (6,)),                  # running_mean
                1.0 + 0.1 * jnp.abs(jax.random.normal(ks[5], (6,))))   # running_var

    p["w2"] = 0.1 * jax.random.normal(ks[6], (16, 6, 5, 5), jnp.float32)
    p["b2"] = 0.1 * jax.random.normal(ks[7], (16,), jnp.float32)
    p["bn2"] = (1.0 + 0.1 * jax.random.normal(ks[8], (16,)),
                0.1 * jax.random.normal(ks[9], (16,)),
                0.1 * jax.random.normal(ks[10], (16,)),
                1.0 + 0.1 * jnp.abs(jax.random.normal(ks[11], (16,))))

    p["w3"] = 0.1 * jax.random.normal(ks[12], (120, 16, 5, 5), jnp.float32)
    p["b3"] = 0.1 * jax.random.normal(ks[13], (120,), jnp.float32)
    kb = jax.random.split(ks[14], 8)
    p["bn3"] = (1.0 + 0.1 * jax.random.normal(kb[0], (120,)),
                0.1 * jax.random.normal(kb[1], (120,)),
                0.1 * jax.random.normal(kb[2], (120,)),
                1.0 + 0.1 * jnp.abs(jax.random.normal(kb[3], (120,))))

    p["wf1"] = 0.1 * jax.random.normal(kb[4], (84, 120), jnp.float32)
    p["bf1"] = 0.1 * jax.random.normal(kb[5], (84,), jnp.float32)
    p["wf2"] = 0.1 * jax.random.normal(kb[6], (num_classes, 84), jnp.float32)
    p["bf2"] = 0.1 * jax.random.normal(kb[7], (num_classes,), jnp.float32)
    return p


# --------------------------- pure-JAX reference ----------------------------- #
def _reference_forward(x, p, eps=1e-5):
    def bn(z, bnp):
        gamma, beta, mean, var = bnp
        s = gamma / jnp.sqrt(var + eps)
        return z * s[None, :, None, None] + (beta - mean * s)[None, :, None, None]

    def conv(z, w, b):
        out = jax.lax.conv_general_dilated(
            z, w, window_strides=(1, 1), padding="VALID",
            dimension_numbers=("NCHW", "OIHW", "NCHW"))
        return out + b[None, :, None, None]

    def pool(z):
        return jax.lax.reduce_window(z, -jnp.inf, jax.lax.max,
                                     (1, 1, 2, 2), (1, 1, 2, 2), "VALID")

    z = x.astype(jnp.float32)
    z = pool(jax.nn.relu(bn(conv(z, p["w1"], p["b1"]), p["bn1"])))
    z = pool(jax.nn.relu(bn(conv(z, p["w2"], p["b2"]), p["bn2"])))
    z = jax.nn.relu(bn(conv(z, p["w3"], p["b3"]), p["bn3"]))
    z = z.reshape(z.shape[0], -1)
    z = jax.nn.relu(z @ p["wf1"].T + p["bf1"])
    return z @ p["wf2"].T + p["bf2"]


if __name__ == "__main__":
    num_classes = 10
    batch = 2
    key = jax.random.PRNGKey(0)
    kx, kp = jax.random.split(key)
    x = jax.random.normal(kx, (batch, 1, 32, 32), jnp.float32)   # LeNet5 expects 1x32x32
    params = init_params(kp, num_classes=num_classes)
    prep = prepare_params(params, num_classes=num_classes, batch_block=batch)

    out = lenet5_forward(x, prep, num_classes=num_classes)
    out = jax.block_until_ready(out)
    assert out.shape == (batch, num_classes), out.shape

    # loose sanity check vs pure-JAX reference (both use default TPU matmul precision)
    ref = _reference_forward(x, params)
    err = float(jnp.max(jnp.abs(out - ref)))
    scale = float(jnp.max(jnp.abs(ref))) + 1e-6
    assert err <= 0.1 * scale + 1e-2, ("mismatch vs reference", err, scale)

    print("KERNEL_OK")
</pallas_src>

<mosaic_0001>
module attributes {stable_mosaic.version = 11 : i64} {
  func.func @_lenet5_kernel(%arg0: i32, %arg1: memref<64x160xf32, #tpu.memory_space<vmem>>, %arg2: memref<160x168xf32, #tpu.memory_space<vmem>>, %arg3: memref<1x168xf32, #tpu.memory_space<vmem>>, %arg4: memref<2x40x64xbf16, #tpu.memory_space<vmem>>, %arg5: memref<2x168x84xbf16, #tpu.memory_space<vmem>>, %arg6: memref<420x160xf32, #tpu.memory_space<vmem>>, %arg7: memref<1x160xf32, #tpu.memory_space<vmem>>, %arg8: memref<2x16x32xbf16, #tpu.memory_space<vmem>>, %arg9: memref<2x160x80xbf16, #tpu.memory_space<vmem>>, %arg10: memref<400x120xf32, #tpu.memory_space<vmem>>, %arg11: memref<1x120xf32, #tpu.memory_space<vmem>>, %arg12: memref<8x10xbf16, #tpu.memory_space<vmem>>, %arg13: memref<120x84xf32, #tpu.memory_space<vmem>>, %arg14: memref<1x84xf32, #tpu.memory_space<vmem>>, %arg15: memref<84x128xf32, #tpu.memory_space<vmem>>, %arg16: memref<1x128xf32, #tpu.memory_space<vmem>>, %arg17: memref<8x128xf32, #tpu.memory_space<vmem>>) attributes {dimension_semantics = [#tpu.dimension_semantics<parallel>], iteration_bounds = array<i64: 1>, scalar_prefetch = 0 : i64, scratch_operands = 0 : i64, tpu.core_type = #tpu.core_type<tc>, window_params = [{transform_indices = @transform_0, window_bounds = array<i64: 64, 160>}, {pipeline_mode = #tpu.pipeline_mode<synchronous>, transform_indices = @transform_1, window_bounds = array<i64: 160, 168>}, {pipeline_mode = #tpu.pipeline_mode<synchronous>, transform_indices = @transform_2, window_bounds = array<i64: 1, 168>}, {pipeline_mode = #tpu.pipeline_mode<synchronous>, transform_indices = @transform_3, window_bounds = array<i64: 2, 40, 64>}, {pipeline_mode = #tpu.pipeline_mode<synchronous>, transform_indices = @transform_4, window_bounds = array<i64: 2, 168, 84>}, {pipeline_mode = #tpu.pipeline_mode<synchronous>, transform_indices = @transform_5, window_bounds = array<i64: 420, 160>}, {pipeline_mode = #tpu.pipeline_mode<synchronous>, transform_indices = @transform_6, window_bounds = array<i64: 1, 160>}, {pipeline_mode = #tpu.pipeline_mode<synchronous>, transform_indices = @transform_7, window_bounds = array<i64: 2, 16, 32>}, {pipeline_mode = #tpu.pipeline_mode<synchronous>, transform_indices = @transform_8, window_bounds = array<i64: 2, 160, 80>}, {pipeline_mode = #tpu.pipeline_mode<synchronous>, transform_indices = @transform_9, window_bounds = array<i64: 400, 120>}, {pipeline_mode = #tpu.pipeline_mode<synchronous>, transform_indices = @transform_10, window_bounds = array<i64: 1, 120>}, {pipeline_mode = #tpu.pipeline_mode<synchronous>, transform_indices = @transform_11, window_bounds = array<i64: 8, 10>}, {pipeline_mode = #tpu.pipeline_mode<synchronous>, transform_indices = @transform_12, window_bounds = array<i64: 120, 84>}, {pipeline_mode = #tpu.pipeline_mode<synchronous>, transform_indices = @transform_13, window_bounds = array<i64: 1, 84>}, {pipeline_mode = #tpu.pipeline_mode<synchronous>, transform_indices = @transform_14, window_bounds = array<i64: 84, 128>}, {pipeline_mode = #tpu.pipeline_mode<synchronous>, transform_indices = @transform_15, window_bounds = array<i64: 1, 128>}, {transform_indices = @transform_16, window_bounds = array<i64: 8, 128>}]} {
    %c0 = arith.constant 0 : index
    %c0_0 = arith.constant 0 : index
    %0 = vector.load %arg1[%c0, %c0_0] : memref<64x160xf32, #tpu.memory_space<vmem>>, vector<64x160xf32>
    %c0_1 = arith.constant 0 : index
    %c0_2 = arith.constant 0 : index
    %1 = vector.load %arg2[%c0_1, %c0_2] : memref<160x168xf32, #tpu.memory_space<vmem>>, vector<160x168xf32>
    %cst = arith.constant dense<0.000000e+00> : vector<64x168xf32>
    %2 = tpu.matmul %0, %1, %cst {dimension_numbers = #tpu.dot_dimension_numbers<[1], [0], [0], [1], [0, 0, 1, 1], [], []>} : vector<64x160xf32>, vector<160x168xf32>, vector<64x168xf32> -> vector<64x168xf32>
    %c0_3 = arith.constant 0 : index
    %c0_4 = arith.constant 0 : index
    %3 = vector.load %arg3[%c0_3, %c0_4] : memref<1x168xf32, #tpu.memory_space<vmem>>, vector<1x168xf32>
    %4 = vector.broadcast %3 : vector<1x168xf32> to vector<64x168xf32>
    %5 = arith.addf %2, %4 : vector<64x168xf32>
    %cst_5 = arith.constant 0.000000e+00 : f32
    %6 = vector.broadcast %cst_5 : f32 to vector<64x168xf32>
    %7 = arith.maximumf %5, %6 : vector<64x168xf32>
    %c0_6 = arith.constant 0 : index
    %c0_7 = arith.constant 0 : index
    %c0_8 = arith.constant 0 : index
    %8 = vector.load %arg4[%c0_6, %c0_7, %c0_8] : memref<2x40x64xbf16, #tpu.memory_space<vmem>>, vector<1x40x64xbf16>
    %9 = vector.shape_cast %8 : vector<1x40x64xbf16> to vector<40x64xbf16>
    %10 = arith.extf %9 : vector<40x64xbf16> to vector<40x64xf32>
    %cst_9 = arith.constant dense<0.000000e+00> : vector<40x168xf32>
    %11 = tpu.matmul %10, %7, %cst_9 {dimension_numbers = #tpu.dot_dimension_numbers<[1], [0], [0], [1], [0, 0, 1, 1], [], []>} : vector<40x64xf32>, vector<64x168xf32>, vector<40x168xf32> -> vector<40x168xf32>
    %c1 = arith.constant 1 : index
    %c0_10 = arith.constant 0 : index
    %c0_11 = arith.constant 0 : index
    %12 = vector.load %arg4[%c1, %c0_10, %c0_11] : memref<2x40x64xbf16, #tpu.memory_space<vmem>>, vector<1x40x64xbf16>
    %13 = vector.shape_cast %12 : vector<1x40x64xbf16> to vector<40x64xbf16>
    %14 = arith.extf %13 : vector<40x64xbf16> to vector<40x64xf32>
    %cst_12 = arith.constant dense<0.000000e+00> : vector<40x168xf32>
    %15 = tpu.matmul %14, %7, %cst_12 {dimension_numbers = #tpu.dot_dimension_numbers<[1], [0], [0], [1], [0, 0, 1, 1], [], []>} : vector<40x64xf32>, vector<64x168xf32>, vector<40x168xf32> -> vector<40x168xf32>
    %16 = arith.maximumf %11, %15 : vector<40x168xf32>
    %c0_13 = arith.constant 0 : index
    %c0_14 = arith.constant 0 : index
    %c0_15 = arith.constant 0 : index
    %17 = vector.load %arg5[%c0_13, %c0_14, %c0_15] : memref<2x168x84xbf16, #tpu.memory_space<vmem>>, vector<1x168x84xbf16>
    %18 = vector.shape_cast %17 : vector<1x168x84xbf16> to vector<168x84xbf16>
    %19 = arith.extf %18 : vector<168x84xbf16> to vector<168x84xf32>
    %cst_16 = arith.constant dense<0.000000e+00> : vector<40x84xf32>
    %20 = tpu.matmul %16, %19, %cst_16 {dimension_numbers = #tpu.dot_dimension_numbers<[1], [0], [0], [1], [0, 0, 1, 1], [], []>} : vector<40x168xf32>, vector<168x84xf32>, vector<40x84xf32> -> vector<40x84xf32>
    %c1_17 = arith.constant 1 : index
    %c0_18 = arith.constant 0 : index
    %c0_19 = arith.constant 0 : index
    %21 = vector.load %arg5[%c1_17, %c0_18, %c0_19] : memref<2x168x84xbf16, #tpu.memory_space<vmem>>, vector<1x168x84xbf16>
    %22 = vector.shape_cast %21 : vector<1x168x84xbf16> to vector<168x84xbf16>
    %23 = arith.extf %22 : vector<168x84xbf16> to vector<168x84xf32>
    %cst_20 = arith.constant dense<0.000000e+00> : vector<40x84xf32>
    %24 = tpu.matmul %16, %23, %cst_20 {dimension_numbers = #tpu.dot_dimension_numbers<[1], [0], [0], [1], [0, 0, 1, 1], [], []>} : vector<40x168xf32>, vector<168x84xf32>, vector<40x84xf32> -> vector<40x84xf32>
    %25 = arith.maximumf %20, %24 : vector<40x84xf32>
    %26 = vector.extract_strided_slice %25 {offsets = [0, 0], sizes = [32, 84], strides = [1, 1]} : vector<40x84xf32> to vector<32x84xf32>
    %27 = vector.extract_strided_slice %25 {offsets = [1, 0], sizes = [32, 84], strides = [1, 1]} : vector<40x84xf32> to vector<32x84xf32>
    %28 = vector.extract_strided_slice %25 {offsets = [2, 0], sizes = [32, 84], strides = [1, 1]} : vector<40x84xf32> to vector<32x84xf32>
    %29 = vector.extract_strided_slice %25 {offsets = [3, 0], sizes = [32, 84], strides = [1, 1]} : vector<40x84xf32> to vector<32x84xf32>
    %30 = vector.extract_strided_slice %25 {offsets = [4, 0], sizes = [32, 84], strides = [1, 1]} : vector<40x84xf32> to vector<32x84xf32>
    %31 = tpu.concatenate %26, %27, %28, %29, %30 in 1 : vector<32x84xf32>, vector<32x84xf32>, vector<32x84xf32>, vector<32x84xf32>, vector<32x84xf32> -> vector<32x420xf32>
    %c0_21 = arith.constant 0 : index
    %c0_22 = arith.constant 0 : index
    %32 = vector.load %arg6[%c0_21, %c0_22] : memref<420x160xf32, #tpu.memory_space<vmem>>, vector<420x160xf32>
    %cst_23 = arith.constant dense<0.000000e+00> : vector<32x160xf32>
    %33 = tpu.matmul %31, %32, %cst_23 {dimension_numbers = #tpu.dot_dimension_numbers<[1], [0], [0], [1], [0, 0, 1, 1], [], []>} : vector<32x420xf32>, vector<420x160xf32>, vector<32x160xf32> -> vector<32x160xf32>
    %c0_24 = arith.constant 0 : index
    %c0_25 = arith.constant 0 : index
    %34 = vector.load %arg7[%c0_24, %c0_25] : memref<1x160xf32, #tpu.memory_space<vmem>>, vector<1x160xf32>
    %35 = vector.broadcast %34 : vector<1x160xf32> to vector<32x160xf32>
    %36 = arith.addf %33, %35 : vector<32x160xf32>
    %cst_26 = arith.constant 0.000000e+00 : f32
    %37 = vector.broadcast %cst_26 : f32 to vector<32x160xf32>
    %38 = arith.maximumf %36, %37 : vector<32x160xf32>
    %c0_27 = arith.constant 0 : index
    %c0_28 = arith.constant 0 : index
    %c0_29 = arith.constant 0 : index
    %39 = vector.load %arg8[%c0_27, %c0_28, %c0_29] : memref<2x16x32xbf16, #tpu.memory_space<vmem>>, vector<1x16x32xbf16>
    %40 = vector.shape_cast %39 : vector<1x16x32xbf16> to vector<16x32xbf16>
    %41 = arith.extf %40 : vector<16x32xbf16> to vector<16x32xf32>
    %cst_30 = arith.constant dense<0.000000e+00> : vector<16x160xf32>
    %42 = tpu.matmul %41, %38, %cst_30 {dimension_numbers = #tpu.dot_dimension_numbers<[1], [0], [0], [1], [0, 0, 1, 1], [], []>} : vector<16x32xf32>, vector<32x160xf32>, vector<16x160xf32> -> vector<16x160xf32>
    %c1_31 = arith.constant 1 : index
    %c0_32 = arith.constant 0 : index
    %c0_33 = arith.constant 0 : index
    %43 = vector.load %arg8[%c1_31, %c0_32, %c0_33] : memref<2x16x32xbf16, #tpu.memory_space<vmem>>, vector<1x16x32xbf16>
    %44 = vector.shape_cast %43 : vector<1x16x32xbf16> to vector<16x32xbf16>
    %45 = arith.extf %44 : vector<16x32xbf16> to vector<16x32xf32>
    %cst_34 = arith.constant dense<0.000000e+00> : vector<16x160xf32>
    %46 = tpu.matmul %45, %38, %cst_34 {dimension_numbers = #tpu.dot_dimension_numbers<[1], [0], [0], [1], [0, 0, 1, 1], [], []>} : vector<16x32xf32>, vector<32x160xf32>, vector<16x160xf32> -> vector<16x160xf32>
    %47 = arith.maximumf %42, %46 : vector<16x160xf32>
    %c0_35 = arith.constant 0 : index
    %c0_36 = arith.constant 0 : index
    %c0_37 = arith.constant 0 : index
    %48 = vector.load %arg9[%c0_35, %c0_36, %c0_37] : memref<2x160x80xbf16, #tpu.memory_space<vmem>>, vector<1x160x80xbf16>
    %49 = vector.shape_cast %48 : vector<1x160x80xbf16> to vector<160x80xbf16>
    %50 = arith.extf %49 : vector<160x80xbf16> to vector<160x80xf32>
    %cst_38 = arith.constant dense<0.000000e+00> : vector<16x80xf32>
    %51 = tpu.matmul %47, %50, %cst_38 {dimension_numbers = #tpu.dot_dimension_numbers<[1], [0], [0], [1], [0, 0, 1, 1], [], []>} : vector<16x160xf32>, vector<160x80xf32>, vector<16x80xf32> -> vector<16x80xf32>
    %c1_39 = arith.constant 1 : index
    %c0_40 = arith.constant 0 : index
    %c0_41 = arith.constant 0 : index
    %52 = vector.load %arg9[%c1_39, %c0_40, %c0_41] : memref<2x160x80xbf16, #tpu.memory_space<vmem>>, vector<1x160x80xbf16>
    %53 = vector.shape_cast %52 : vector<1x160x80xbf16> to vector<160x80xbf16>
    %54 = arith.extf %53 : vector<160x80xbf16> to vector<160x80xf32>
    %cst_42 = arith.constant dense<0.000000e+00> : vector<16x80xf32>
    %55 = tpu.matmul %47, %54, %cst_42 {dimension_numbers = #tpu.dot_dimension_numbers<[1], [0], [0], [1], [0, 0, 1, 1], [], []>} : vector<16x160xf32>, vector<160x80xf32>, vector<16x80xf32> -> vector<16x80xf32>
    %56 = arith.maximumf %51, %55 : vector<16x80xf32>
    %57 = vector.extract_strided_slice %56 {offsets = [0, 0], sizes = [10, 80], strides = [1, 1]} : vector<16x80xf32> to vector<10x80xf32>
    %58 = vector.extract_strided_slice %56 {offsets = [1, 0], sizes = [10, 80], strides = [1, 1]} : vector<16x80xf32> to vector<10x80xf32>
    %59 = vector.extract_strided_slice %56 {offsets = [2, 0], sizes = [10, 80], strides = [1, 1]} : vector<16x80xf32> to vector<10x80xf32>
    %60 = vector.extract_strided_slice %56 {offsets = [3, 0], sizes = [10, 80], strides = [1, 1]} : vector<16x80xf32> to vector<10x80xf32>
    %61 = vector.extract_strided_slice %56 {offsets = [4, 0], sizes = [10, 80], strides = [1, 1]} : vector<16x80xf32> to vector<10x80xf32>
    %62 = tpu.concatenate %57, %58, %59, %60, %61 in 1 : vector<10x80xf32>, vector<10x80xf32>, vector<10x80xf32>, vector<10x80xf32>, vector<10x80xf32> -> vector<10x400xf32>
    %c0_43 = arith.constant 0 : index
    %c0_44 = arith.constant 0 : index
    %63 = vector.load %arg10[%c0_43, %c0_44] : memref<400x120xf32, #tpu.memory_space<vmem>>, vector<400x120xf32>
    %cst_45 = arith.constant dense<0.000000e+00> : vector<10x120xf32>
    %64 = tpu.matmul %62, %63, %cst_45 {dimension_numbers = #tpu.dot_dimension_numbers<[1], [0], [0], [1], [0, 0, 1, 1], [], []>} : vector<10x400xf32>, vector<400x120xf32>, vector<10x120xf32> -> vector<10x120xf32>
    %c0_46 = arith.constant 0 : index
    %c0_47 = arith.constant 0 : index
    %65 = vector.load %arg12[%c0_46, %c0_47] : memref<8x10xbf16, #tpu.memory_space<vmem>>, vector<8x10xbf16>
    %66 = arith.extf %65 : vector<8x10xbf16> to vector<8x10xf32>
    %cst_48 = arith.constant dense<0.000000e+00> : vector<8x120xf32>
    %67 = tpu.matmul %66, %64, %cst_48 {dimension_numbers = #tpu.dot_dimension_numbers<[1], [0], [0], [1], [0, 0, 1, 1], [], []>} : vector<8x10xf32>, vector<10x120xf32>, vector<8x120xf32> -> vector<8x120xf32>
    %c0_49 = arith.constant 0 : index
    %c0_50 = arith.constant 0 : index
    %68 = vector.load %arg11[%c0_49, %c0_50] : memref<1x120xf32, #tpu.memory_space<vmem>>, vector<1x120xf32>
    %69 = vector.broadcast %68 : vector<1x120xf32> to vector<8x120xf32>
    %70 = arith.addf %67, %69 : vector<8x120xf32>
    %cst_51 = arith.constant 0.000000e+00 : f32
    %71 = vector.broadcast %cst_51 : f32 to vector<8x120xf32>
    %72 = arith.maximumf %70, %71 : vector<8x120xf32>
    %c0_52 = arith.constant 0 : index
    %c0_53 = arith.constant 0 : index
    %73 = vector.load %arg13[%c0_52, %c0_53] : memref<120x84xf32, #tpu.memory_space<vmem>>, vector<120x84xf32>
    %cst_54 = arith.constant dense<0.000000e+00> : vector<8x84xf32>
    %74 = tpu.matmul %72, %73, %cst_54 {dimension_numbers = #tpu.dot_dimension_numbers<[1], [0], [0], [1], [0, 0, 1, 1], [], []>} : vector<8x120xf32>, vector<120x84xf32>, vector<8x84xf32> -> vector<8x84xf32>
    %c0_55 = arith.constant 0 : index
    %c0_56 = arith.constant 0 : index
    %75 = vector.load %arg14[%c0_55, %c0_56] : memref<1x84xf32, #tpu.memory_space<vmem>>, vector<1x84xf32>
    %76 = vector.broadcast %75 : vector<1x84xf32> to vector<8x84xf32>
    %77 = arith.addf %74, %76 : vector<8x84xf32>
    %cst_57 = arith.constant 0.000000e+00 : f32
    %78 = vector.broadcast %cst_57 : f32 to vector<8x84xf32>
    %79 = arith.maximumf %77, %78 : vector<8x84xf32>
    %c0_58 = arith.constant 0 : index
    %c0_59 = arith.constant 0 : index
    %80 = vector.load %arg15[%c0_58, %c0_59] : memref<84x128xf32, #tpu.memory_space<vmem>>, vector<84x128xf32>
    %cst_60 = arith.constant dense<0.000000e+00> : vector<8x128xf32>
    %81 = tpu.matmul %79, %80, %cst_60 {dimension_numbers = #tpu.dot_dimension_numbers<[1], [0], [0], [1], [0, 0, 1, 1], [], []>} : vector<8x84xf32>, vector<84x128xf32>, vector<8x128xf32> -> vector<8x128xf32>
    %c0_61 = arith.constant 0 : index
    %c0_62 = arith.constant 0 : index
    %82 = vector.load %arg16[%c0_61, %c0_62] : memref<1x128xf32, #tpu.memory_space<vmem>>, vector<1x128xf32>
    %83 = vector.broadcast %82 : vector<1x128xf32> to vector<8x128xf32>
    %84 = arith.addf %81, %83 : vector<8x128xf32>
    %c0_63 = arith.constant 0 : index
    %c0_64 = arith.constant 0 : index
    %85 = vector.load %arg17[%c0_63, %c0_64] : memref<8x128xf32, #tpu.memory_space<vmem>>, vector<8x128xf32>
    tpu.vector_store %arg17[%c0_63, %c0_64], %84 {strides = array<i32>} : memref<8x128xf32, #tpu.memory_space<vmem>>, vector<8x128xf32>,
    return
  }
  func.func @transform_0(%arg0: i32) -> (i32, i32) {
    %c0_i32 = arith.constant 0 : i32
    %c0_i32_0 = arith.constant 0 : i32
    return %arg0, %c0_i32 : i32, i32
  }
  func.func @transform_1(%arg0: i32) -> (i32, i32) {
    %c0_i32 = arith.constant 0 : i32
    %c0_i32_0 = arith.constant 0 : i32
    %c0_i32_1 = arith.constant 0 : i32
    return %c0_i32, %c0_i32_0 : i32, i32
  }
  func.func @transform_2(%arg0: i32) -> (i32, i32) {
    %c0_i32 = arith.constant 0 : i32
    %c0_i32_0 = arith.constant 0 : i32
    %c0_i32_1 = arith.constant 0 : i32
    return %c0_i32, %c0_i32_0 : i32, i32
  }
  func.func @transform_3(%arg0: i32) -> (i32, i32, i32) {
    %c0_i32 = arith.constant 0 : i32
    %c0_i32_0 = arith.constant 0 : i32
    %c0_i32_1 = arith.constant 0 : i32
    %c0_i32_2 = arith.constant 0 : i32
    return %c0_i32, %c0_i32_0, %c0_i32_1 : i32, i32, i32
  }
  func.func @transform_4(%arg0: i32) -> (i32, i32, i32) {
    %c0_i32 = arith.constant 0 : i32
    %c0_i32_0 = arith.constant 0 : i32
    %c0_i32_1 = arith.constant 0 : i32
    %c0_i32_2 = arith.constant 0 : i32
    return %c0_i32, %c0_i32_0, %c0_i32_1 : i32, i32, i32
  }
  func.func @transform_5(%arg0: i32) -> (i32, i32) {
    %c0_i32 = arith.constant 0 : i32
    %c0_i32_0 = arith.constant 0 : i32
    %c0_i32_1 = arith.constant 0 : i32
    return %c0_i32, %c0_i32_0 : i32, i32
  }
  func.func @transform_6(%arg0: i32) -> (i32, i32) {
    %c0_i32 = arith.constant 0 : i32
    %c0_i32_0 = arith.constant 0 : i32
    %c0_i32_1 = arith.constant 0 : i32
    return %c0_i32, %c0_i32_0 : i32, i32
  }
  func.func @transform_7(%arg0: i32) -> (i32, i32, i32) {
    %c0_i32 = arith.constant 0 : i32
    %c0_i32_0 = arith.constant 0 : i32
    %c0_i32_1 = arith.constant 0 : i32
    %c0_i32_2 = arith.constant 0 : i32
    return %c0_i32, %c0_i32_0, %c0_i32_1 : i32, i32, i32
  }
  func.func @transform_8(%arg0: i32) -> (i32, i32, i32) {
    %c0_i32 = arith.constant 0 : i32
    %c0_i32_0 = arith.constant 0 : i32
    %c0_i32_1 = arith.constant 0 : i32
    %c0_i32_2 = arith.constant 0 : i32
    return %c0_i32, %c0_i32_0, %c0_i32_1 : i32, i32, i32
  }
  func.func @transform_9(%arg0: i32) -> (i32, i32) {
    %c0_i32 = arith.constant 0 : i32
    %c0_i32_0 = arith.constant 0 : i32
    %c0_i32_1 = arith.constant 0 : i32
    return %c0_i32, %c0_i32_0 : i32, i32
  }
  func.func @transform_10(%arg0: i32) -> (i32, i32) {
    %c0_i32 = arith.constant 0 : i32
    %c0_i32_0 = arith.constant 0 : i32
    %c0_i32_1 = arith.constant 0 : i32
    return %c0_i32, %c0_i32_0 : i32, i32
  }
  func.func @transform_11(%arg0: i32) -> (i32, i32) {
    %c0_i32 = arith.constant 0 : i32
    %c0_i32_0 = arith.constant 0 : i32
    %c0_i32_1 = arith.constant 0 : i32
    return %c0_i32, %c0_i32_0 : i32, i32
  }
  func.func @transform_12(%arg0: i32) -> (i32, i32) {
    %c0_i32 = arith.constant 0 : i32
    %c0_i32_0 = arith.constant 0 : i32
    %c0_i32_1 = arith.constant 0 : i32
    return %c0_i32, %c0_i32_0 : i32, i32
  }
  func.func @transform_13(%arg0: i32) -> (i32, i32) {
    %c0_i32 = arith.constant 0 : i32
    %c0_i32_0 = arith.constant 0 : i32
    %c0_i32_1 = arith.constant 0 : i32
    return %c0_i32, %c0_i32_0 : i32, i32
  }
  func.func @transform_14(%arg0: i32) -> (i32, i32) {
    %c0_i32 = arith.constant 0 : i32
    %c0_i32_0 = arith.constant 0 : i32
    %c0_i32_1 = arith.constant 0 : i32
    return %c0_i32, %c0_i32_0 : i32, i32
  }
  func.func @transform_15(%arg0: i32) -> (i32, i32) {
    %c0_i32 = arith.constant 0 : i32
    %c0_i32_0 = arith.constant 0 : i32
    %c0_i32_1 = arith.constant 0 : i32
    return %c0_i32, %c0_i32_0 : i32, i32
  }
  func.func @transform_16(%arg0: i32) -> (i32, i32) {
    %c0_i32 = arith.constant 0 : i32
    %c0_i32_0 = arith.constant 0 : i32
    return %arg0, %c0_i32 : i32, i32
  }
}

</mosaic_0001>

<bundles_post_ra>
// kernel: _forward_impl.1
= control target key start
LH: loop header
LB: loop body
LE: loop exit
PB: predicated region body
PF: predicated region fallthrough
CT: control target
= control target key end

     0   :  { %vm121_vm0 = vcmask 261120   ;;  %v2697_v56 = vmov 0.0   ;;  %vm285_vm1 = vcmask 523264   ;;  %vm569_vm2 = vcmask 326656   ;;  %s2698_s20 = smov 80   ;;  %s2700_s24 = smov 84   ;;  %s3972_s1 = inlined_call_operand.vmem [shape: f32[160,168], index: 1, kind: input, shape index: {}]   ;;  %s3973_s0 = inlined_call_operand.vmem [shape: f32[64,160], index: 0, kind: input, shape index: {}]   ;;  %s3974_s4 = inlined_call_operand.vmem [shape: bf16[2,168,84], index: 4, kind: input, shape index: {}]   ;;  %s3975_s2 = inlined_call_operand.vmem [shape: f32[1,168], index: 2, kind: input, shape index: {}]   ;;  %s3976_s3 = inlined_call_operand.vmem [shape: bf16[2,40,64], index: 3, kind: input, shape index: {}]   ;;  %s3977_s5 = inlined_call_operand.vmem [shape: f32[420,160], index: 5, kind: input, shape index: {}]   ;;  %s3978_s8 = inlined_call_operand.vmem [shape: bf16[2,160,80], index: 8, kind: input, shape index: {}]   ;;  %s3979_s6 = inlined_call_operand.vmem [shape: f32[1,160], index: 6, kind: input, shape index: {}]   ;;  %s3980_s7 = inlined_call_operand.vmem [shape: bf16[2,16,32], index: 7, kind: input, shape index: {}]   ;;  %s3981_s9 = inlined_call_operand.vmem [shape: f32[400,120], index: 9, kind: input, shape index: {}]   ;;  %s3982_s11 = inlined_call_operand.vmem [shape: bf16[8,10], index: 11, kind: input, shape index: {}]   ;;  %s3983_s12 = inlined_call_operand.vmem [shape: f32[120,84], index: 12, kind: input, shape index: {}]   ;;  %s3984_s14 = inlined_call_operand.vmem [shape: f32[84,128], index: 14, kind: input, shape index: {}]   ;;  %s3985_s10 = inlined_call_operand.vmem [shape: f32[1,120], index: 10, kind: input, shape index: {}]   ;;  %s3986_s13 = inlined_call_operand.vmem [shape: f32[1,84], index: 13, kind: input, shape index: {}]   ;;  %s3987_s15 = inlined_call_operand.vmem [shape: f32[1,128], index: 15, kind: input, shape index: {}]   ;;  %s3988_s16 = inlined_call_operand.vmem [shape: f32[8,128], index: 16, kind: output, shape index: {}]  }
   0x1   :  { %3990 = sst [smem:[#allocation2_spill]] %s3972_s1  ;;  %v54_v16 = vld [vmem:[%s3973_s0 + $0x8] sm:$0xff]  ;;  %v53_v41 = vld [vmem:[%s3973_s0] sm:$0xff]  ;;  %v56_v42 = vld [vmem:[%s3973_s0 + $0x18] sm:$0xff]  ;;  %365 = vmatprep.mubr.f32.mxu1 %v2697_v56  ;;  %vm884_vm3 = vcmask 1043456   ;;  %vm862_vm4 = vcmask 1044480  }
   0x2   :  { %s3991_s23 = sld [smem:[#allocation2_spill]]  ;;  %2198 = vmatprep.mubr.msk.f32.mxu0 %vm121_vm0, %v54_v16  ;;  %v55_v43 = vld [vmem:[%s3973_s0 + $0x10] sm:$0xff]  ;;  %v58_v44 = vld [vmem:[%s3973_s0 + $0x28] sm:$0xff]  ;;  %v57_v45 = vld [vmem:[%s3973_s0 + $0x20] sm:$0xff]  ;;  %vm818_vm5 = vcmask 1046528   ;;  %vm840_vm6 = vcmask 1045504  }
   0x3   :  { %v60_v46 = vld [vmem:[%s3973_s0 + $0x38] sm:$0xff]  ;;  %v59_v47 = vld [vmem:[%s3973_s0 + $0x30] sm:$0xff]  ;;  %v62_v48 = vld [vmem:[%s3973_s0 + $0x48] sm:$0xff]  ;;  %vm1043_vm7 = vcmask 293888   ;;  %vm920_vm8 = vcmask 654336   ;;  %vm915_vm9 = vcmask 1014784  }
   0x4   :  { %v61_v49 = vld [vmem:[%s3973_s0 + $0x40] sm:$0xff]  ;;  %v64_v50 = vld [vmem:[%s3973_s0 + $0x58] sm:$0xff]  ;;  %v63_v51 = vld [vmem:[%s3973_s0 + $0x50] sm:$0xff]  ;;  %vm906_vm10 = vcmask 687104   ;;  %s2702_s22 = smov 32   ;;  %vm1704_vm11 = vcmask 916480  }
   0x5   :  { %v66_v52 = vld [vmem:[%s3973_s0 + $0x68] sm:$0xff]  ;;  %v65_v53 = vld [vmem:[%s3973_s0 + $0x60] sm:$0xff]  ;;  %v68_v54 = vld [vmem:[%s3973_s0 + $0x78] sm:$0xff]  ;;  %vm1759_vm12 = vcmask 130048   ;;  %vm2705_vm13 = vmmov 0   ;;  %vm1927_vm14 = vcmask 1041408  }
   0x6   :  { %v67_v55 = vld [vmem:[%s3973_s0 + $0x70] sm:$0xff]  ;;  %v2500_v58 = vld [vmem:[%s3974_s4 + $0x88] sm:$0xff]   ;;  %v2499_v61 = vld [vmem:[%s3974_s4 + $0x80] sm:$0xff]   ;;  %s2701_s0 = smov 40   ;;  %vm1923_vm15 = vcmask 80896  }
   0x7   :  { %v2972_v57 = vld [vmem:[%s3974_s4 + $0x90] sm:$0xff]   ;;  %v2381_v60 = vunpack.c.h.bf16 %v2500_v58  ;;  %v2380_v62 = vunpack.c.l.bf16 %v2500_v58  ;;  %v2377_v63 = vunpack.c.h.bf16 %v2499_v61 }
   0x8   :  { %v100_v0 = vld [vmem:[%s3991_s23 + $0xf8] sm:$0xff]  ;;  %v99_v1 = vld [vmem:[%s3991_s23 + $0xf0] sm:$0xff]  ;;  %v98_v2 = vld [vmem:[%s3991_s23 + $0xe8] sm:$0xff]  ;;  %v2384_v59 = vunpack.c.l.bf16 %v2972_v57 }
   0x9   :  { %146 = vmatprep.subr.mxu0 %v100_v0  ;;  %v97_v3 = vld [vmem:[%s3991_s23 + $0xe0] sm:$0xff]  ;;  %v96_v4 = vld [vmem:[%s3991_s23 + $0xd8] sm:$0xff]  ;;  %v95_v5 = vld [vmem:[%s3991_s23 + $0xd0] sm:$0xff] }
   0xa   :  { %147 = vmatpush1.msra.mxu0 %v99_v1  ;;  %v94_v6 = vld [vmem:[%s3991_s23 + $0xc8] sm:$0xff]  ;;  %v93_v7 = vld [vmem:[%s3991_s23 + $0xc0] sm:$0xff]  ;;  %v92_v8 = vld [vmem:[%s3991_s23 + $0xb8] sm:$0xff]  ;;  %v2376_v1 = vunpack.c.l.bf16 %v2499_v61 }
   0xb   :  { %148 = vmatprep.subr.mxu0 %v98_v2  ;;  %v91_v9 = vld [vmem:[%s3991_s23 + $0xb0] sm:$0xff]  ;;  %v90_v10 = vld [vmem:[%s3991_s23 + $0xa8] sm:$0xff]  ;;  %v89_v11 = vld [vmem:[%s3991_s23 + $0xa0] sm:$0xff] }
   0xc   :  { %149 = vmatpush1.msra.mxu0 %v97_v3  ;;  %v88_v12 = vld [vmem:[%s3991_s23 + $0x98] sm:$0xff]  ;;  %v87_v13 = vld [vmem:[%s3991_s23 + $0x90] sm:$0xff]  ;;  %v86_v14 = vld [vmem:[%s3991_s23 + $0x88] sm:$0xff] }
   0xd   :  { %150 = vmatprep.subr.mxu0 %v96_v4  ;;  %v85_v15 = vld [vmem:[%s3991_s23 + $0x80] sm:$0xff]  ;;  %v84_v17 = vld [vmem:[%s3991_s23 + $0x78] sm:$0xff]  ;;  %v83_v18 = vld [vmem:[%s3991_s23 + $0x70] sm:$0xff] }
   0xe   :  { %151 = vmatpush1.msra.mxu0 %v95_v5  ;;  %v82_v19 = vld [vmem:[%s3991_s23 + $0x68] sm:$0xff]  ;;  %v81_v20 = vld [vmem:[%s3991_s23 + $0x60] sm:$0xff]  ;;  %v80_v21 = vld [vmem:[%s3991_s23 + $0x58] sm:$0xff] }
   0xf   :  { %152 = vmatprep.subr.mxu0 %v94_v6  ;;  %v79_v22 = vld [vmem:[%s3991_s23 + $0x50] sm:$0xff]  ;;  %v78_v23 = vld [vmem:[%s3991_s23 + $0x48] sm:$0xff]  ;;  %v77_v24 = vld [vmem:[%s3991_s23 + $0x40] sm:$0xff] }
  0x10   :  { %153 = vmatpush1.msra.mxu0 %v93_v7  ;;  %v76_v25 = vld [vmem:[%s3991_s23 + $0x38] sm:$0xff]  ;;  %v75_v26 = vld [vmem:[%s3991_s23 + $0x30] sm:$0xff]  ;;  %v74_v27 = vld [vmem:[%s3991_s23 + $0x28] sm:$0xff] }
  0x11   :  { %154 = vmatprep.subr.mxu0 %v92_v8  ;;  %v73_v28 = vld [vmem:[%s3991_s23 + $0x20] sm:$0xff]  ;;  %v72_v29 = vld [vmem:[%s3991_s23 + $0x18] sm:$0xff]  ;;  %v71_v30 = vld [vmem:[%s3991_s23 + $0x10] sm:$0xff] }
  0x12   :  { %155 = vmatpush1.msra.mxu0 %v91_v9  ;;  %v70_v31 = vld [vmem:[%s3991_s23 + $0x8] sm:$0xff]  ;;  %v69_v32 = vld [vmem:[%s3991_s23] sm:$0xff]  ;;  %v108_v33 = vld [vmem:[%s3991_s23 + $0x138] sm:$0xff] }
  0x13   :  { %156 = vmatprep.subr.mxu0 %v90_v10  ;;  %v107_v34 = vld [vmem:[%s3991_s23 + $0x130] sm:$0xff]  ;;  %v106_v35 = vld [vmem:[%s3991_s23 + $0x128] sm:$0xff]  ;;  %v105_v36 = vld [vmem:[%s3991_s23 + $0x120] sm:$0xff] }
  0x14   :  { %157 = vmatpush1.msra.mxu0 %v89_v11  ;;  %v104_v37 = vld [vmem:[%s3991_s23 + $0x118] sm:$0xff]  ;;  %v103_v38 = vld [vmem:[%s3991_s23 + $0x110] sm:$0xff]  ;;  %v102_v39 = vld [vmem:[%s3991_s23 + $0x108] sm:$0xff] }
  0x15   :  { %158 = vmatprep.subr.mxu0 %v88_v12  ;;  %v101_v40 = vld [vmem:[%s3991_s23 + $0x100] sm:$0xff]  ;;  %v2498_v0 = vld [vmem:[%s3974_s4 + $0x78] sm:$0xff]   ;;  %v2991_v3 = vld [vmem:[%s3974_s4 + $0x70] sm:$0xff]  }
  0x16   :  { %159 = vmatpush1.msra.mxu0 %v87_v13  ;;  %v2373_v2 = vunpack.c.h.bf16 %v2498_v0  ;;  %v2372_v4 = vunpack.c.l.bf16 %v2498_v0  ;;  %v2369_v5 = vunpack.c.h.bf16 %v2991_v3 }
  0x17   :  { %160 = vmatprep.subr.mxu0 %v86_v14  ;;  %v111_v14 = vlaneseq }
  0x18   :  { %161 = vmatpush1.msra.mxu0 %v85_v15 }
  0x19   :  { %162 = vmatprep.subr.mxu0 %v84_v17  ;;  %v2998_v17 = vshrl.u32 %v111_v14, 7 }
  0x1a   :  { %163 = vmatpush1.msra.mxu0 %v83_v18 }
  0x1b   :  { %164 = vmatprep.subr.mxu0 %v82_v19 }
  0x1c   :  { %165 = vmatpush1.msra.mxu0 %v81_v20  ;;  %v113_v20 = vsub.s32 0, %v2998_v17 }
  0x1d   :  { %166 = vmatprep.subr.mxu0 %v80_v21 }
  0x1e   :  { %167 = vmatpush1.msra.mxu0 %v79_v22  ;;  %v109_v22 = vld [vmem:[%s3975_s2] sm:$0x3] }
  0x1f   :  { %168 = vmatprep.subr.mxu0 %v78_v23  ;;  %v117_v23 = vsub.s32 1, %v2998_v17 }
  0x20   :  { %169 = vmatpush1.msra.mxu0 %v77_v24 }
  0x21   :  { %170 = vmatprep.subr.mxu0 %v76_v25  ;;  %v114_v25 = vrot.slane %v109_v22, %v113_v20 }
  0x22   :  { %171 = vmatpush1.msra.mxu0 %v75_v26 }
  0x23   :  { %172 = vmatprep.subr.mxu0 %v74_v27  ;;  %v118_v27 = vrot.slane %v109_v22, %v117_v23 }
  0x24   :  { %173 = vmatpush1.msra.mxu0 %v73_v28 }
  0x25   :  { %174 = vmatprep.subr.mxu0 %v72_v29 }
  0x26   :  { %175 = vmatpush1.msra.mxu0 %v71_v30 }
  0x27   :  { %176 = vmatprep.subr.mxu0 %v70_v31 }
  0x28   :  { %177 = vmatpush1.msra.mxu0 %v69_v32 }
  0x29   :  { %202 = vmatprep.subr.mxu0 %v108_v33 }
  0x2a   :  { %203 = vmatpush2.msra.mxu0 %v107_v34 }
  0x2b   :  { %204 = vmatprep.subr.mxu0 %v106_v35 }
  0x2c   :  { %205 = vmatpush2.msra.mxu0 %v105_v36 }
  0x2d   :  { %206 = vmatprep.subr.mxu0 %v104_v37 }
  0x2e   :  { %207 = vmatpush2.msra.mxu0 %v103_v38 }
  0x2f   :  { %208 = vmatprep.subr.mxu0 %v102_v39 }
  0x30   :  { %209 = vmatpush2.msra.mxu0 %v101_v40 }
  0x31   :  { %211 = vmatmul.mubr.f32.vlgmr.msra.gmra.mxu0 %v53_v41  ;;  %718 = vmatprep.subr.mxu0 %v2697_v56 }
  0x32   :  { %2199 = vmatprep.mubr.msk.f32.mxu0 %vm121_vm0, %v56_v42  ;;  %719 = vmatpush1.msra.mxu0 %v2384_v59  ;;  %v2299_v59 = vld [vmem:[%s3976_s3] sm:$0xff]  }
  0x33   :  { %720 = vmatprep.subr.mxu0 %v2697_v56 }
  0x34   :  { %721 = vmatpush1.msra.mxu0 %v2381_v60 }
  0x35   :  { %217 = vmatmul.mubr.f32.gmra.mxu0 %v55_v43  ;;  %722 = vmatprep.subr.mxu0 %v2697_v56 }
  0x36   :  { %2200 = vmatprep.mubr.msk.f32.mxu0 %vm121_vm0, %v58_v44  ;;  %723 = vmatpush1.msra.mxu0 %v2380_v62 }
  0x37   :  { %724 = vmatprep.subr.mxu0 %v2697_v56 }
  0x38   :  { %725 = vmatpush1.msra.mxu0 %v2377_v63  ;;  %v2300_v63 = vunpack.c.l.bf16 %v2299_v59 }
  0x39   :  { %223 = vmatmul.mubr.f32.gmra.mxu0 %v57_v45  ;;  %726 = vmatprep.subr.mxu0 %v2697_v56 }
  0x3a   :  { %2201 = vmatprep.mubr.msk.f32.mxu0 %vm121_vm0, %v60_v46  ;;  %727 = vmatpush1.msra.mxu0 %v2376_v1  ;;  %v2301_v1 = vunpack.c.h.bf16 %v2299_v59 }
  0x3b   :  { %728 = vmatprep.subr.mxu0 %v2697_v56 }
  0x3c   :  { %729 = vmatpush1.msra.mxu0 %v2373_v2  ;;  %v2482_v2 = vld [vmem:[%s3976_s3 + $0x8] sm:$0xff]  }
  0x3d   :  { %229 = vmatmul.mubr.f32.gmra.mxu0 %v59_v47  ;;  %730 = vmatprep.subr.mxu0 %v2697_v56 }
  0x3e   :  { %2202 = vmatprep.mubr.msk.f32.mxu0 %vm121_vm0, %v62_v48  ;;  %731 = vmatpush1.msra.mxu0 %v2372_v4  ;;  %v2304_v4 = vunpack.c.l.bf16 %v2482_v2 }
  0x3f   :  { %732 = vmatprep.subr.mxu0 %v2697_v56 }
  0x40   :  { %733 = vmatpush1.msra.mxu0 %v2369_v5  ;;  %v2305_v5 = vunpack.c.h.bf16 %v2482_v2 }
  0x41   :  { %235 = vmatmul.mubr.f32.gmra.mxu0 %v61_v49  ;;  %734 = vmatprep.subr.mxu0 %v2697_v56 }
  0x42   :  { %2203 = vmatprep.mubr.msk.f32.mxu0 %vm121_vm0, %v64_v50 }
  0x45   :  { %241 = vmatmul.mubr.f32.gmra.mxu0 %v63_v51 }
  0x46   :  { %2204 = vmatprep.mubr.msk.f32.mxu0 %vm121_vm0, %v66_v52 }
  0x49   :  { %247 = vmatmul.mubr.f32.gmra.mxu0 %v65_v53 }
  0x4a   :  { %2205 = vmatprep.mubr.msk.f32.mxu0 %vm121_vm0, %v68_v54 }
  0x4d   :  { %253 = vmatmul.mubr.f32.gmra.mxu0 %v67_v55 }
  0xf1   :  { %v212_v6 = vpop.f32.mrf.mxu0 }
  0xf2   :  { %v213_v55 = vadd.f32 %v212_v6, %v114_v25  ;;  %v279_v6 = vld [vmem:[%s3976_s3 + $0x10] sm:$0xff]  }
  0xf3   :  { %v214_v7 = vpop.f32.mrf.mxu0 }
  0xf4   :  { %v215_v53 = vadd.f32 %v214_v7, %v118_v27  ;;  %v259_v0 = vmax.f32 %v213_v55, 0.0  ;;  %v284_v7 = vunpack.c.l.bf16 %v279_v6 }
  0xf5   :  { %v218_v8 = vpop.f32.mrf.mxu0 }
  0xf6   :  { %v219_v51 = vadd.f32 %v218_v8, %v114_v25  ;;  %v260_v62 = vmax.f32 %v215_v53, 0.0  ;;  %v2491_v8 = vld [vmem:[%s3974_s4 + $0x38] sm:$0xff]   ;;  %v2503_v53 = vld [vmem:[%s3974_s4 + $0xa0] sm:$0xff]  }
  0xf7   :  { %v220_v9 = vpop.f32.mrf.mxu0  ;;  %v2393_v55 = vunpack.c.h.bf16 %v2503_v53 }
  0xf8   :  { %v221_v49 = vadd.f32 %v220_v9, %v118_v27  ;;  %v261_v61 = vmax.f32 %v219_v51, 0.0  ;;  %v402_v9 = vunpack.c.h.bf16 %v279_v6 }
  0xf9   :  { %v224_v10 = vpop.f32.mrf.mxu0 }
  0xfa   :  { %v225_v47 = vadd.f32 %v224_v10, %v114_v25  ;;  %v262_v60 = vmax.f32 %v221_v49, 0.0  ;;  %v2483_v10 = vld [vmem:[%s3976_s3 + $0x18] sm:$0xff]  }
  0xfb   :  { %v226_v11 = vpop.f32.mrf.mxu0  ;;  %v2308_v14 = vunpack.c.l.bf16 %v2483_v10 }
  0xfc   :  { %v227_v45 = vadd.f32 %v226_v11, %v118_v27  ;;  %v263_v58 = vmax.f32 %v225_v47, 0.0  ;;  %v2345_v11 = vunpack.c.h.bf16 %v2491_v8  ;;  %v2315_v47 = vld [vmem:[%s3974_s4] sm:$0xff]  }
  0xfd   :  { %v230_v12 = vpop.f32.mrf.mxu0  ;;  %v2316_v51 = vunpack.c.l.bf16 %v2315_v47 }
  0xfe   :  { %v231_v43 = vadd.f32 %v230_v12, %v114_v25  ;;  %v264_v54 = vmax.f32 %v227_v45, 0.0  ;;  %v2490_v12 = vld [vmem:[%s3974_s4 + $0x30] sm:$0xff]  }
  0xff   :  { %v232_v13 = vpop.f32.mrf.mxu0 }
 0x100   :  { %v233_v41 = vadd.f32 %v232_v13, %v118_v27  ;;  %v265_v52 = vmax.f32 %v231_v43, 0.0  ;;  %v2344_v13 = vunpack.c.l.bf16 %v2491_v8 }
 0x101   :  { %v236_v15 = vpop.f32.mrf.mxu0 }
 0x102   :  { %v237_v39 = vadd.f32 %v236_v15, %v114_v25  ;;  %v266_v50 = vmax.f32 %v233_v41, 0.0  ;;  %v2341_v15 = vunpack.c.h.bf16 %v2490_v12  ;;  %v2485_v41 = vld [vmem:[%s3974_s4 + $0x8] sm:$0xff]  }
 0x103   :  { %v238_v16 = vpop.f32.mrf.mxu0  ;;  %v2320_v45 = vunpack.c.l.bf16 %v2485_v41 }
 0x104   :  { %v239_v37 = vadd.f32 %v238_v16, %v118_v27  ;;  %v267_v48 = vmax.f32 %v237_v39, 0.0  ;;  %v2489_v16 = vld [vmem:[%s3974_s4 + $0x28] sm:$0xff]  }
 0x105   :  { %v242_v18 = vpop.f32.mrf.mxu0  ;;  %v2337_v22 = vunpack.c.h.bf16 %v2489_v16 }
 0x106   :  { %v243_v35 = vadd.f32 %v242_v18, %v114_v25  ;;  %v268_v46 = vmax.f32 %v239_v37, 0.0  ;;  %v2340_v18 = vunpack.c.l.bf16 %v2490_v12 }
 0x107   :  { %v244_v19 = vpop.f32.mrf.mxu0 }
 0x108   :  { %v245_v33 = vadd.f32 %v244_v19, %v118_v27  ;;  %v269_v44 = vmax.f32 %v243_v35, 0.0  ;;  %v2309_v19 = vunpack.c.h.bf16 %v2483_v10 }
 0x109   :  { %v248_v21 = vpop.f32.mrf.mxu0 }
 0x10a   :  { %v249_v32 = vadd.f32 %v248_v21, %v114_v25  ;;  %v270_v42 = vmax.f32 %v245_v33, 0.0  ;;  %v2484_v21 = vld [vmem:[%s3976_s3 + $0x20] sm:$0xff]   ;;  %v2496_v33 = vld [vmem:[%s3974_s4 + $0x68] sm:$0xff]  }
 0x10b   :  { %v250_v24 = vpop.f32.mrf.mxu0  ;;  %v2365_v35 = vunpack.c.h.bf16 %v2496_v33 }
 0x10c   :  { %v251_v30 = vadd.f32 %v250_v24, %v118_v27  ;;  %v271_v40 = vmax.f32 %v249_v32, 0.0  ;;  %v2488_v24 = vld [vmem:[%s3974_s4 + $0x20] sm:$0xff]   ;;  %v2368_v32 = vunpack.c.l.bf16 %v2991_v3  ;;  %v2364_v3 = vunpack.c.l.bf16 %v2496_v33 }
 0x10d   :  { %v254_v26 = vpop.f32.mrf.mxu0 }
 0x10e   :  { %v255_v28 = vadd.f32 %v254_v26, %v114_v25  ;;  %v272_v38 = vmax.f32 %v251_v30, 0.0  ;;  %v2336_v25 = vunpack.c.l.bf16 %v2489_v16  ;;  %v2312_v26 = vunpack.c.l.bf16 %v2484_v21  ;;  %v2487_v30 = vld [vmem:[%s3974_s4 + $0x18] sm:$0xff]   ;;  %735 = vmatpush1.msra.mxu0 %v2368_v32 }
 0x10f   :  { %v256_v29 = vpop.f32.mrf.mxu0  ;;  %736 = vmatprep.subr.mxu0 %v2697_v56 }
 0x110   :  { %v257_v31 = vadd.f32 %v256_v29, %v118_v27  ;;  %v273_v36 = vmax.f32 %v255_v28, 0.0  ;;  %v2333_v27 = vunpack.c.h.bf16 %v2488_v24  ;;  %v2332_v28 = vunpack.c.l.bf16 %v2488_v24  ;;  %737 = vmatpush1.msra.mxu0 %v2365_v35 }
 0x111   :  { %v2313_v29 = vunpack.c.h.bf16 %v2484_v21  ;;  %738 = vmatprep.subr.mxu0 %v2697_v56 }
 0x112   :  { %v274_v34 = vmax.f32 %v257_v31, 0.0  ;;  %v2329_v31 = vunpack.c.h.bf16 %v2487_v30  ;;  %739 = vmatpush1.msra.mxu0 %v2364_v3  ;;  %v956_v3 = vld [vmem:[%s3977_s5 + $0xf8] sm:$0xff] }
 0x113   :  { %740 = vmatprep.subr.mxu0 %v2697_v56 }
 0x114   :  { %317 = vmatprep.subr.mxu1 %v274_v34 }
 0x115   :  { %318 = vmatpush1.msra.mxu1 %v273_v36 }
 0x116   :  { %319 = vmatprep.subr.mxu1 %v272_v38 }
 0x117   :  { %320 = vmatpush1.msra.mxu1 %v271_v40 }
 0x118   :  { %321 = vmatprep.subr.mxu1 %v270_v42 }
 0x119   :  { %322 = vmatpush1.msra.mxu1 %v269_v44 }
 0x11a   :  { %323 = vmatprep.subr.mxu1 %v268_v46 }
 0x11b   :  { %324 = vmatpush1.msra.mxu1 %v267_v48 }
 0x11c   :  { %325 = vmatprep.subr.mxu1 %v266_v50 }
 0x11d   :  { %326 = vmatpush1.msra.mxu1 %v265_v52 }
 0x11e   :  { %327 = vmatprep.subr.mxu1 %v264_v54 }
 0x11f   :  { %328 = vmatpush1.msra.mxu1 %v263_v58 }
 0x120   :  { %329 = vmatprep.subr.mxu1 %v262_v60 }
 0x121   :  { %330 = vmatpush1.msra.mxu1 %v261_v61 }
 0x122   :  { %331 = vmatprep.subr.mxu1 %v260_v62 }
 0x123   :  { %332 = vmatpush1.msra.mxu1 %v259_v0 }
 0x124   :  { %2206 = vmatmul.mubr.msk.f32.vlgmr.msra.gmra.mxu1 %vm285_vm1, %v2300_v63  ;;  %438 = vmatprep.subr.mxu1 %v274_v34  ;;  %v2328_v34 = vunpack.c.l.bf16 %v2487_v30 }
 0x125   :  { %439 = vmatpush1.msra.mxu1 %v273_v36  ;;  %371 = vmatprep.mubr.f32.mxu1 %v2697_v56  ;;  %v2486_v36 = vld [vmem:[%s3974_s4 + $0x10] sm:$0xff]  }
 0x126   :  { %440 = vmatprep.subr.mxu1 %v272_v38  ;;  %v2325_v37 = vunpack.c.h.bf16 %v2486_v36  ;;  %v2495_v38 = vld [vmem:[%s3974_s4 + $0x60] sm:$0xff]   ;;  %v2324_v39 = vunpack.c.l.bf16 %v2486_v36 }
 0x127   :  { %441 = vmatpush1.msra.mxu1 %v271_v40  ;;  %v2361_v40 = vunpack.c.h.bf16 %v2495_v38  ;;  %v2360_v43 = vunpack.c.l.bf16 %v2495_v38  ;;  %v955_v38 = vld [vmem:[%s3977_s5 + $0xf0] sm:$0xff] }
 0x128   :  { %2207 = vmatmul.mubr.msk.f32.gmra.mxu1 %vm285_vm1, %v2301_v1  ;;  %442 = vmatprep.subr.mxu1 %v270_v42  ;;  %v2321_v42 = vunpack.c.h.bf16 %v2485_v41  ;;  %v952_v41 = vld [vmem:[%s3977_s5 + $0xd8] sm:$0xff] }
 0x129   :  { %443 = vmatpush1.msra.mxu1 %v269_v44  ;;  %377 = vmatprep.mubr.f32.mxu1 %v2697_v56  ;;  %v2494_v44 = vld [vmem:[%s3974_s4 + $0x58] sm:$0xff]  }
 0x12a   :  { %444 = vmatprep.subr.mxu1 %v268_v46  ;;  %741 = vmatpush1.msra.mxu0 %v2361_v40  ;;  %v2357_v46 = vunpack.c.h.bf16 %v2494_v44  ;;  %v2356_v49 = vunpack.c.l.bf16 %v2494_v44  ;;  %v953_v40 = vld [vmem:[%s3977_s5 + $0xe0] sm:$0xff] }
 0x12b   :  { %445 = vmatpush1.msra.mxu1 %v267_v48  ;;  %742 = vmatprep.subr.mxu0 %v2697_v56  ;;  %v2317_v48 = vunpack.c.h.bf16 %v2315_v47  ;;  %v949_v44 = vld [vmem:[%s3977_s5 + $0xc0] sm:$0xff]  ;;  %v1019_v47 = vld [vmem:[%s3977_s5 + $0x2f0] sm:$0xff] }
 0x12c   :  { %2208 = vmatmul.mubr.msk.f32.gmra.mxu1 %vm285_vm1, %v2304_v4  ;;  %446 = vmatprep.subr.mxu1 %v266_v50  ;;  %v2226_v50 = vld [vmem:[%s3974_s4 + $0x50] sm:$0xff]  }
 0x12d   :  { %447 = vmatpush1.msra.mxu1 %v265_v52  ;;  %383 = vmatprep.mubr.f32.mxu1 %v2697_v56  ;;  %v697_v52 = vunpack.c.h.bf16 %v2226_v50 }
 0x12e   :  { %448 = vmatprep.subr.mxu1 %v264_v54  ;;  %743 = vmatpush1.msra.mxu0 %v2360_v43  ;;  %v568_v54 = vunpack.c.l.bf16 %v2226_v50  ;;  %v950_v43 = vld [vmem:[%s3977_s5 + $0xc8] sm:$0xff]  ;;  %v1017_v50 = vld [vmem:[%s3977_s5 + $0x2e0] sm:$0xff] }
 0x12f   :  { %449 = vmatpush1.msra.mxu1 %v263_v58  ;;  %744 = vmatprep.subr.mxu0 %v2697_v56  ;;  %v2493_v58 = vld [vmem:[%s3974_s4 + $0x48] sm:$0xff]  }
 0x130   :  { %2209 = vmatmul.mubr.msk.f32.gmra.mxu1 %vm285_vm1, %v2305_v5  ;;  %450 = vmatprep.subr.mxu1 %v262_v60  ;;  %v2353_v59 = vunpack.c.h.bf16 %v2493_v58  ;;  %v2392_v60 = vunpack.c.l.bf16 %v2503_v53  ;;  %v2385_v5 = vunpack.c.h.bf16 %v2972_v57  ;;  %v945_v53 = vld [vmem:[%s3977_s5 + $0xa0] sm:$0xff] }
 0x131   :  { %451 = vmatpush1.msra.mxu1 %v261_v61  ;;  %389 = vmatprep.mubr.f32.mxu1 %v2697_v56  ;;  %v2502_v61 = vld [vmem:[%s3974_s4 + $0x98] sm:$0xff]  }
 0x132   :  { %452 = vmatprep.subr.mxu1 %v260_v62  ;;  %745 = vmatpush1.msra.mxu0 %v2357_v46  ;;  %v2352_v62 = vunpack.c.l.bf16 %v2493_v58  ;;  %v2389_v63 = vunpack.c.h.bf16 %v2502_v61  ;;  %v2388_v2 = vunpack.c.l.bf16 %v2502_v61  ;;  %v948_v46 = vld [vmem:[%s3977_s5 + $0xb8] sm:$0xff] }
 0x133   :  { %453 = vmatpush1.msra.mxu1 %v259_v0  ;;  %746 = vmatprep.subr.mxu0 %v2697_v56  ;;  %v2492_v0 = vld [vmem:[%s3974_s4 + $0x40] sm:$0xff]   ;;  %v944_v58 = vld [vmem:[%s3977_s5 + $0x98] sm:$0xff] }
 0x134   :  { %2210 = vmatmul.mubr.msk.f32.gmra.mxu1 %vm285_vm1, %v284_v7  ;;  %585 = vmatprep.subr.mxu1 %v2697_v56  ;;  %v2349_v1 = vunpack.c.h.bf16 %v2492_v0  ;;  %v2348_v4 = vunpack.c.l.bf16 %v2492_v0  ;;  %v1012_v61 = vld [vmem:[%s3977_s5 + $0x2b8] sm:$0xff]  ;;  %v941_v0 = vld [vmem:[%s3977_s5 + $0x80] sm:$0xff] }
 0x135   :  { %486 = vmatprep.mubr.f32.mxu1 %v2697_v56  ;;  %747 = vmatpush1.msra.mxu0 %v2356_v49  ;;  %v1018_v49 = vld [vmem:[%s3977_s5 + $0x2e8] sm:$0xff] }
 0x136   :  { %748 = vmatprep.subr.mxu0 %v2697_v56 }
 0x137   :  { %749 = vmatpush1.msra.mxu0 %v697_v52  ;;  %v1016_v52 = vld [vmem:[%s3977_s5 + $0x2d8] sm:$0xff] }
 0x138   :  { %2216 = vmatmul.mubr.msk.f32.vlgmr.msra.gmra.mxu1 %vm285_vm1, %v402_v9  ;;  %772 = vmatprep.subr.mxu0 %v2697_v56 }
 0x139   :  { %492 = vmatprep.mubr.f32.mxu1 %v2697_v56  ;;  %586 = vmatpush1.msra.mxu1 %v2345_v11 }
 0x13a   :  { %587 = vmatprep.subr.mxu1 %v2697_v56  ;;  %773 = vmatpush2.msra.mxu0 %v2393_v55  ;;  %v1014_v55 = vld [vmem:[%s3977_s5 + $0x2c8] sm:$0xff] }
 0x13b   :  { %588 = vmatpush1.msra.mxu1 %v2344_v13  ;;  %774 = vmatprep.subr.mxu0 %v2697_v56 }
 0x13c   :  { %2217 = vmatmul.mubr.msk.f32.gmra.mxu1 %vm285_vm1, %v2308_v14  ;;  %589 = vmatprep.subr.mxu1 %v2697_v56 }
 0x13d   :  { %498 = vmatprep.mubr.f32.mxu1 %v2697_v56  ;;  %590 = vmatpush1.msra.mxu1 %v2341_v15 }
 0x13e   :  { %591 = vmatprep.subr.mxu1 %v2697_v56  ;;  %775 = vmatpush2.msra.mxu0 %v2392_v60  ;;  %v943_v60 = vld [vmem:[%s3977_s5 + $0x90] sm:$0xff] }
 0x13f   :  { %592 = vmatpush1.msra.mxu1 %v2340_v18  ;;  %776 = vmatprep.subr.mxu0 %v2697_v56 }
 0x140   :  { %2218 = vmatmul.mubr.msk.f32.gmra.mxu1 %vm285_vm1, %v2309_v19  ;;  %593 = vmatprep.subr.mxu1 %v2697_v56 }
 0x141   :  { %504 = vmatprep.mubr.f32.mxu1 %v2697_v56  ;;  %594 = vmatpush1.msra.mxu1 %v2337_v22 }
 0x142   :  { %595 = vmatprep.subr.mxu1 %v2697_v56  ;;  %777 = vmatpush2.msra.mxu0 %v2389_v63  ;;  %v1011_v63 = vld [vmem:[%s3977_s5 + $0x2b0] sm:$0xff] }
 0x143   :  { %596 = vmatpush1.msra.mxu1 %v2336_v25  ;;  %778 = vmatprep.subr.mxu0 %v2697_v56 }
 0x144   :  { %2219 = vmatmul.mubr.msk.f32.gmra.mxu1 %vm285_vm1, %v2312_v26  ;;  %597 = vmatprep.subr.mxu1 %v2697_v56 }
 0x145   :  { %510 = vmatprep.mubr.f32.mxu1 %v2697_v56  ;;  %598 = vmatpush1.msra.mxu1 %v2333_v27 }
 0x146   :  { %599 = vmatprep.subr.mxu1 %v2697_v56  ;;  %779 = vmatpush2.msra.mxu0 %v2388_v2  ;;  %v940_v2 = vld [vmem:[%s3977_s5 + $0x78] sm:$0xff] }
 0x147   :  { %600 = vmatpush1.msra.mxu1 %v2332_v28  ;;  %780 = vmatprep.subr.mxu0 %v2697_v56 }
 0x148   :  { %2220 = vmatmul.mubr.msk.f32.gmra.mxu1 %vm285_vm1, %v2313_v29  ;;  %601 = vmatprep.subr.mxu1 %v2697_v56 }
 0x149   :  { %602 = vmatpush1.msra.mxu1 %v2329_v31  ;;  %781 = vmatpush2.msra.mxu0 %v2385_v5  ;;  %v939_v5 = vld [vmem:[%s3977_s5 + $0x70] sm:$0xff] }
 0x14a   :  { %603 = vmatprep.subr.mxu1 %v2697_v56 }
 0x14b   :  { %604 = vmatpush1.msra.mxu1 %v2328_v34 }
 0x14c   :  { %605 = vmatprep.subr.mxu1 %v2697_v56 }
 0x14d   :  { %606 = vmatpush1.msra.mxu1 %v2325_v37 }
 0x14e   :  { %607 = vmatprep.subr.mxu1 %v2697_v56 }
 0x14f   :  { %608 = vmatpush1.msra.mxu1 %v2324_v39  ;;  %v954_v39 = vld [vmem:[%s3977_s5 + $0xe8] sm:$0xff] }
 0x150   :  { %609 = vmatprep.subr.mxu1 %v2697_v56 }
 0x151   :  { %610 = vmatpush1.msra.mxu1 %v2321_v42  ;;  %v951_v42 = vld [vmem:[%s3977_s5 + $0xd0] sm:$0xff] }
 0x152   :  { %611 = vmatprep.subr.mxu1 %v2697_v56 }
 0x153   :  { %612 = vmatpush1.msra.mxu1 %v2320_v45  ;;  %v1020_v45 = vld [vmem:[%s3977_s5 + $0x2f8] sm:$0xff] }
 0x154   :  { %613 = vmatprep.subr.mxu1 %v2697_v56  ;;  %1147 = vmatprep.subr.mxu0 %v1020_v45  ;;  %v989_v45 = vld [vmem:[%s3977_s5 + $0x200] sm:$0xff] }
 0x155   :  { %614 = vmatpush1.msra.mxu1 %v2317_v48  ;;  %v947_v48 = vld [vmem:[%s3977_s5 + $0xb0] sm:$0xff] }
 0x156   :  { %615 = vmatprep.subr.mxu1 %v2697_v56 }
 0x157   :  { %616 = vmatpush1.msra.mxu1 %v2316_v51  ;;  %v946_v51 = vld [vmem:[%s3977_s5 + $0xa8] sm:$0xff] }
 0x158   :  { %639 = vmatprep.subr.mxu1 %v2697_v56 }
 0x159   :  { %640 = vmatpush2.msra.mxu1 %v568_v54  ;;  %v1015_v54 = vld [vmem:[%s3977_s5 + $0x2d0] sm:$0xff] }
 0x15a   :  { %641 = vmatprep.subr.mxu1 %v2697_v56 }
 0x15b   :  { %642 = vmatpush2.msra.mxu1 %v2353_v59  ;;  %v1013_v59 = vld [vmem:[%s3977_s5 + $0x2c0] sm:$0xff] }
 0x15c   :  { %643 = vmatprep.subr.mxu1 %v2697_v56 }
 0x15d   :  { %644 = vmatpush2.msra.mxu1 %v2352_v62  ;;  %v942_v62 = vld [vmem:[%s3977_s5 + $0x88] sm:$0xff] }
 0x15e   :  { %645 = vmatprep.subr.mxu1 %v2697_v56 }
 0x15f   :  { %646 = vmatpush2.msra.mxu1 %v2349_v1  ;;  %v1010_v1 = vld [vmem:[%s3977_s5 + $0x2a8] sm:$0xff] }
 0x160   :  { %647 = vmatprep.subr.mxu1 %v2697_v56 }
 0x161   :  { %648 = vmatpush2.msra.mxu1 %v2348_v4  ;;  %v1009_v4 = vld [vmem:[%s3977_s5 + $0x2a0] sm:$0xff] }
 0x162   :  { %1058 = vmatprep.subr.mxu1 %v956_v3  ;;  %v993_v3 = vld [vmem:[%s3977_s5 + $0x220] sm:$0xff] }
 0x1e4   :  { %v367_v6 = vpop.f32.mrf.mxu1 }
 0x1e6   :  { %v369_v7 = vpop.f32.mrf.mxu1 }
 0x1e8   :  { %v373_v8 = vpop.f32.mrf.mxu1 }
 0x1ea   :  { %v375_v9 = vpop.f32.mrf.mxu1 }
 0x1ec   :  { %v379_v10 = vpop.f32.mrf.mxu1 }
 0x1ee   :  { %v381_v11 = vpop.f32.mrf.mxu1 }
 0x1f0   :  { %v385_v12 = vpop.f32.mrf.mxu1 }
 0x1f2   :  { %v387_v13 = vpop.f32.mrf.mxu1 }
 0x1f4   :  { %v391_v14 = vpop.f32.mrf.mxu1 }
 0x1f6   :  { %v393_v15 = vpop.f32.mrf.mxu1 }
 0x1f8   :  { %v488_v16 = vpop.f32.mrf.mxu1 }
 0x1f9   :  { %v517_v19 = vmax.f32 %v367_v6, %v488_v16  ;;  %v1008_v6 = vld [vmem:[%s3977_s5 + $0x298] sm:$0xff]  ;;  %v1003_v16 = vld [vmem:[%s3977_s5 + $0x270] sm:$0xff] }
 0x1fa   :  { %v490_v18 = vpop.f32.mrf.mxu1 }
 0x1fb   :  { %v518_v57 = vmax.f32 %v369_v7, %v490_v18  ;;  %v938_v7 = vld [vmem:[%s3977_s5 + $0x68] sm:$0xff]  ;;  %v933_v18 = vld [vmem:[%s3977_s5 + $0x40] sm:$0xff] }
 0x1fc   :  { %v494_v21 = vpop.f32.mrf.mxu1 }
 0x1fd   :  { %2221 = vmatprep.mubr.msk.f32.mxu1 %vm569_vm2, %v518_v57  ;;  %2247 = vmatprep.mubr.msk.f32.mxu0 %vm569_vm2, %v518_v57  ;;  %v519_v25 = vmax.f32 %v373_v8, %v494_v21  ;;  %v1007_v8 = vld [vmem:[%s3977_s5 + $0x290] sm:$0xff]  ;;  %v1002_v57 = vld [vmem:[%s3977_s5 + $0x268] sm:$0xff]  ;;  %v1001_v21 = vld [vmem:[%s3977_s5 + $0x260] sm:$0xff] }
 0x1fe   :  { %v496_v22 = vpop.f32.mrf.mxu1  ;;  %650 = vmatmul.mubr.f32.vlgmr.msra.gmra.mxu1 %v517_v19  ;;  %783 = vmatmul.mubr.f32.vlgmr.msra.gmra.mxu0 %v517_v19  ;;  %v932_v19 = vld [vmem:[%s3977_s5 + $0x38] sm:$0xff] }
 0x1ff   :  { %v520_v24 = vmax.f32 %v375_v9, %v496_v22  ;;  %1059 = vmatpush1.msra.mxu1 %v955_v38  ;;  %1148 = vmatpush1.msra.mxu0 %v1019_v47  ;;  %v937_v9 = vld [vmem:[%s3977_s5 + $0x60] sm:$0xff]  ;;  %v931_v22 = vld [vmem:[%s3977_s5 + $0x30] sm:$0xff]  ;;  %v1030_v47 = vld [vmem:[%s3977_s5 + $0x348] sm:$0xf] }
 0x200   :  { %v500_v26 = vpop.f32.mrf.mxu1  ;;  %1060 = vmatprep.subr.mxu1 %v954_v39  ;;  %1149 = vmatprep.subr.mxu0 %v1018_v49  ;;  %v987_v38 = vld [vmem:[%s3977_s5 + $0x1f0] sm:$0xff]  ;;  %v992_v39 = vld [vmem:[%s3977_s5 + $0x218] sm:$0xff]  ;;  %v981_v49 = vld [vmem:[%s3977_s5 + $0x1c0] sm:$0xff] }
 0x201   :  { %2222 = vmatprep.mubr.msk.f32.mxu1 %vm569_vm2, %v520_v24  ;;  %2248 = vmatprep.mubr.msk.f32.mxu0 %vm569_vm2, %v520_v24  ;;  %v521_v29 = vmax.f32 %v379_v10, %v500_v26  ;;  %v1006_v10 = vld [vmem:[%s3977_s5 + $0x288] sm:$0xff]  ;;  %v1000_v24 = vld [vmem:[%s3977_s5 + $0x258] sm:$0xff]  ;;  %v999_v26 = vld [vmem:[%s3977_s5 + $0x250] sm:$0xff] }
 0x202   :  { %v502_v27 = vpop.f32.mrf.mxu1  ;;  %655 = vmatmul.mubr.f32.gmra.mxu1 %v519_v25  ;;  %788 = vmatmul.mubr.f32.gmra.mxu0 %v519_v25  ;;  %v930_v25 = vld [vmem:[%s3977_s5 + $0x28] sm:$0xff] }
 0x203   :  { %v522_v28 = vmax.f32 %v381_v11, %v502_v27  ;;  %1061 = vmatpush1.msra.mxu1 %v953_v40  ;;  %1150 = vmatpush1.msra.mxu0 %v1017_v50  ;;  %v936_v11 = vld [vmem:[%s3977_s5 + $0x58] sm:$0xff]  ;;  %v929_v27 = vld [vmem:[%s3977_s5 + $0x20] sm:$0xff]  ;;  %v986_v40 = vld [vmem:[%s3977_s5 + $0x1e8] sm:$0xff] }
 0x204   :  { %v506_v30 = vpop.f32.mrf.mxu1  ;;  %1062 = vmatprep.subr.mxu1 %v952_v41  ;;  %1151 = vmatprep.subr.mxu0 %v1016_v52  ;;  %v991_v41 = vld [vmem:[%s3977_s5 + $0x210] sm:$0xff]  ;;  %v980_v50 = vld [vmem:[%s3977_s5 + $0x1b8] sm:$0xff]  ;;  %v978_v52 = vld [vmem:[%s3977_s5 + $0x1a8] sm:$0xff] }
 0x205   :  { %2223 = vmatprep.mubr.msk.f32.mxu1 %vm569_vm2, %v522_v28  ;;  %2249 = vmatprep.mubr.msk.f32.mxu0 %vm569_vm2, %v522_v28  ;;  %v523_v33 = vmax.f32 %v385_v12, %v506_v30  ;;  %v1005_v12 = vld [vmem:[%s3977_s5 + $0x280] sm:$0xff]  ;;  %v998_v28 = vld [vmem:[%s3977_s5 + $0x248] sm:$0xff] }
 0x206   :  { %v508_v31 = vpop.f32.mrf.mxu1  ;;  %660 = vmatmul.mubr.f32.gmra.mxu1 %v521_v29  ;;  %793 = vmatmul.mubr.f32.gmra.mxu0 %v521_v29  ;;  %v928_v29 = vld [vmem:[%s3977_s5 + $0x18] sm:$0xff]  ;;  %v997_v30 = vld [vmem:[%s3977_s5 + $0x240] sm:$0xff] }
 0x207   :  { %v524_v32 = vmax.f32 %v387_v13, %v508_v31  ;;  %1063 = vmatpush1.msra.mxu1 %v951_v42  ;;  %1152 = vmatpush1.msra.mxu0 %v1015_v54  ;;  %v935_v13 = vld [vmem:[%s3977_s5 + $0x50] sm:$0xff]  ;;  %v985_v42 = vld [vmem:[%s3977_s5 + $0x1e0] sm:$0xff]  ;;  %v976_v54 = vld [vmem:[%s3977_s5 + $0x198] sm:$0xff] }
 0x208   :  { %v512_v34 = vpop.f32.mrf.mxu1  ;;  %1064 = vmatprep.subr.mxu1 %v950_v43  ;;  %1153 = vmatprep.subr.mxu0 %v1014_v55  ;;  %v927_v31 = vld [vmem:[%s3977_s5 + $0x10] sm:$0xff]  ;;  %v990_v43 = vld [vmem:[%s3977_s5 + $0x208] sm:$0xff] }
 0x209   :  { %2224 = vmatprep.mubr.msk.f32.mxu1 %vm569_vm2, %v524_v32  ;;  %2250 = vmatprep.mubr.msk.f32.mxu0 %vm569_vm2, %v524_v32  ;;  %v525_v37 = vmax.f32 %v391_v14, %v512_v34  ;;  %v1004_v14 = vld [vmem:[%s3977_s5 + $0x278] sm:$0xff]  ;;  %v995_v34 = vld [vmem:[%s3977_s5 + $0x230] sm:$0xff] }
 0x20a   :  { %v514_v35 = vpop.f32.mrf.mxu1  ;;  %665 = vmatmul.mubr.f32.gmra.mxu1 %v523_v33  ;;  %798 = vmatmul.mubr.f32.gmra.mxu0 %v523_v33  ;;  %v996_v32 = vld [vmem:[%s3977_s5 + $0x238] sm:$0xff]  ;;  %v926_v33 = vld [vmem:[%s3977_s5 + $0x8] sm:$0xff]  ;;  %v975_v55 = vld [vmem:[%s3977_s5 + $0x190] sm:$0xff] }
 0x20b   :  { %v526_v36 = vmax.f32 %v393_v15, %v514_v35  ;;  %1065 = vmatpush1.msra.mxu1 %v949_v44  ;;  %1154 = vmatpush1.msra.mxu0 %v1013_v59  ;;  %v934_v15 = vld [vmem:[%s3977_s5 + $0x48] sm:$0xff]  ;;  %v925_v35 = vld [vmem:[%s3977_s5] sm:$0xff]  ;;  %v984_v44 = vld [vmem:[%s3977_s5 + $0x1d8] sm:$0xff] }
 0x20c   :  { %1066 = vmatprep.subr.mxu1 %v948_v46  ;;  %1155 = vmatprep.subr.mxu0 %v1012_v61  ;;  %v983_v46 = vld [vmem:[%s3977_s5 + $0x1d0] sm:$0xff]  ;;  %v973_v59 = vld [vmem:[%s3977_s5 + $0x180] sm:$0xff] }
 0x20d   :  { %2225 = vmatprep.mubr.msk.f32.mxu1 %vm569_vm2, %v526_v36  ;;  %2251 = vmatprep.mubr.msk.f32.mxu0 %vm569_vm2, %v526_v36  ;;  %v994_v36 = vld [vmem:[%s3977_s5 + $0x228] sm:$0xff]  ;;  %v971_v61 = vld [vmem:[%s3977_s5 + $0x170] sm:$0xff] }
 0x20e   :  { %670 = vmatmul.mubr.f32.gmra.mxu1 %v525_v37  ;;  %803 = vmatmul.mubr.f32.gmra.mxu0 %v525_v37  ;;  %v988_v37 = vld [vmem:[%s3977_s5 + $0x1f8] sm:$0xff] }
 0x20f   :  { %1067 = vmatpush1.msra.mxu1 %v947_v48  ;;  %1156 = vmatpush1.msra.mxu0 %v1011_v63  ;;  %v982_v48 = vld [vmem:[%s3977_s5 + $0x1c8] sm:$0xff] }
 0x210   :  { %1068 = vmatprep.subr.mxu1 %v946_v51  ;;  %1157 = vmatprep.subr.mxu0 %v1010_v1  ;;  %v979_v51 = vld [vmem:[%s3977_s5 + $0x1b0] sm:$0xff]  ;;  %v970_v63 = vld [vmem:[%s3977_s5 + $0x168] sm:$0xff]  ;;  %v969_v1 = vld [vmem:[%s3977_s5 + $0x160] sm:$0xff] }
 0x211   :  { %1069 = vmatpush1.msra.mxu1 %v945_v53  ;;  %1158 = vmatpush1.msra.mxu0 %v1009_v4  ;;  %v977_v53 = vld [vmem:[%s3977_s5 + $0x1a0] sm:$0xff]  ;;  %v968_v4 = vld [vmem:[%s3977_s5 + $0x158] sm:$0xff] }
 0x212   :  { %1070 = vmatprep.subr.mxu1 %v944_v58  ;;  %1159 = vmatprep.subr.mxu0 %v1008_v6  ;;  %v974_v58 = vld [vmem:[%s3977_s5 + $0x188] sm:$0xff]  ;;  %v967_v6 = vld [vmem:[%s3977_s5 + $0x150] sm:$0xff] }
 0x213   :  { %1071 = vmatpush1.msra.mxu1 %v943_v60  ;;  %1160 = vmatpush1.msra.mxu0 %v1007_v8  ;;  %v972_v60 = vld [vmem:[%s3977_s5 + $0x178] sm:$0xff]  ;;  %v966_v8 = vld [vmem:[%s3977_s5 + $0x148] sm:$0xff] }
 0x214   :  { %1072 = vmatprep.subr.mxu1 %v942_v62  ;;  %1161 = vmatprep.subr.mxu0 %v1006_v10  ;;  %v1029_v62 = vld [vmem:[%s3977_s5 + $0x340] sm:$0xf] }
 0x215   :  { %1073 = vmatpush1.msra.mxu1 %v941_v0  ;;  %1162 = vmatpush1.msra.mxu0 %v1005_v12  ;;  %v1028_v0 = vld [vmem:[%s3977_s5 + $0x338] sm:$0xff] }
 0x216   :  { %1074 = vmatprep.subr.mxu1 %v940_v2  ;;  %1163 = vmatprep.subr.mxu0 %v1004_v14  ;;  %v1027_v2 = vld [vmem:[%s3977_s5 + $0x330] sm:$0xff] }
 0x217   :  { %1075 = vmatpush1.msra.mxu1 %v939_v5  ;;  %1164 = vmatpush1.msra.mxu0 %v1003_v16  ;;  %v1026_v5 = vld [vmem:[%s3977_s5 + $0x328] sm:$0xff]  ;;  %v1023_v16 = vld [vmem:[%s3977_s5 + $0x310] sm:$0xff] }
 0x218   :  { %1076 = vmatprep.subr.mxu1 %v938_v7  ;;  %1165 = vmatprep.subr.mxu0 %v1002_v57  ;;  %v1025_v7 = vld [vmem:[%s3977_s5 + $0x320] sm:$0xff] }
 0x219   :  { %1077 = vmatpush1.msra.mxu1 %v937_v9  ;;  %1166 = vmatpush1.msra.mxu0 %v1001_v21  ;;  %v1022_v21 = vld [vmem:[%s3977_s5 + $0x308] sm:$0xff] }
 0x21a   :  { %1078 = vmatprep.subr.mxu1 %v936_v11  ;;  %1167 = vmatprep.subr.mxu0 %v1000_v24  ;;  %v1024_v11 = vld [vmem:[%s3977_s5 + $0x318] sm:$0xff] }
 0x21b   :  { %1079 = vmatpush1.msra.mxu1 %v935_v13  ;;  %1168 = vmatpush1.msra.mxu0 %v999_v26  ;;  %v962_v26 = vld [vmem:[%s3977_s5 + $0x128] sm:$0xff] }
 0x21c   :  { %1080 = vmatprep.subr.mxu1 %v934_v15  ;;  %1169 = vmatprep.subr.mxu0 %v998_v28  ;;  %v965_v15 = vld [vmem:[%s3977_s5 + $0x140] sm:$0xff] }
 0x21d   :  { %1081 = vmatpush1.msra.mxu1 %v933_v18  ;;  %1170 = vmatpush1.msra.mxu0 %v997_v30 }
 0x21e   :  { %1082 = vmatprep.subr.mxu1 %v932_v19  ;;  %1171 = vmatprep.subr.mxu0 %v996_v32  ;;  %v964_v19 = vld [vmem:[%s3977_s5 + $0x138] sm:$0xff] }
 0x21f   :  { %1083 = vmatpush1.msra.mxu1 %v931_v22  ;;  %1172 = vmatpush1.msra.mxu0 %v995_v34  ;;  %v963_v22 = vld [vmem:[%s3977_s5 + $0x130] sm:$0xff]  ;;  %v960_v32 = vld [vmem:[%s3977_s5 + $0x118] sm:$0xff] }
 0x220   :  { %1084 = vmatprep.subr.mxu1 %v930_v25  ;;  %1173 = vmatprep.subr.mxu0 %v994_v36  ;;  %v1021_v25 = vld [vmem:[%s3977_s5 + $0x300] sm:$0xff]  ;;  %v959_v36 = vld [vmem:[%s3977_s5 + $0x110] sm:$0xff] }
 0x221   :  { %1085 = vmatpush1.msra.mxu1 %v929_v27  ;;  %1174 = vmatpush1.msra.mxu0 %v993_v3 }
 0x222   :  { %1086 = vmatprep.subr.mxu1 %v928_v29  ;;  %1175 = vmatprep.subr.mxu0 %v992_v39 }
 0x223   :  { %1087 = vmatpush1.msra.mxu1 %v927_v31  ;;  %1176 = vmatpush1.msra.mxu0 %v991_v41  ;;  %v961_v31 = vld [vmem:[%s3977_s5 + $0x120] sm:$0xff] }
 0x224   :  { %1088 = vmatprep.subr.mxu1 %v926_v33  ;;  %1177 = vmatprep.subr.mxu0 %v990_v43 }
 0x225   :  { %1089 = vmatpush1.msra.mxu1 %v925_v35  ;;  %1178 = vmatpush1.msra.mxu0 %v989_v45 }
 0x226   :  { %1090 = vmatprep.subr.mxu1 %v988_v37  ;;  %2252 = vmatprep.subr.msk.mxu0 %vm884_vm3, %v1030_v47  ;;  %v958_v37 = vld [vmem:[%s3977_s5 + $0x108] sm:$0xff]  ;;  %v957_v47 = vld [vmem:[%s3977_s5 + $0x100] sm:$0xff]  ;;  %s2699_s5 = smov 124  }
 0x227   :  { %1091 = vmatpush2.msra.mxu1 %v987_v38  ;;  %2253 = vmatpush2.msk.msra.mxu0 %vm884_vm3, %v1029_v62 }
 0x228   :  { %1092 = vmatprep.subr.mxu1 %v986_v40  ;;  %1203 = vmatprep.subr.mxu0 %v1028_v0 }
 0x229   :  { %1093 = vmatpush2.msra.mxu1 %v985_v42  ;;  %1204 = vmatpush2.msra.mxu0 %v1027_v2 }
 0x22a   :  { %1094 = vmatprep.subr.mxu1 %v984_v44  ;;  %1205 = vmatprep.subr.mxu0 %v1026_v5 }
 0x22b   :  { %1095 = vmatpush2.msra.mxu1 %v983_v46  ;;  %1206 = vmatpush2.msra.mxu0 %v1025_v7 }
 0x22c   :  { %1096 = vmatprep.subr.mxu1 %v982_v48  ;;  %1207 = vmatprep.subr.mxu0 %v1024_v11 }
 0x22d   :  { %1097 = vmatpush2.msra.mxu1 %v981_v49  ;;  %1208 = vmatpush2.msra.mxu0 %v1023_v16 }
 0x22e   :  { %1098 = vmatprep.subr.mxu1 %v980_v50  ;;  %1209 = vmatprep.subr.mxu0 %v1022_v21 }
 0x22f   :  { %1099 = vmatpush2.msra.mxu1 %v979_v51  ;;  %1210 = vmatpush2.msra.mxu0 %v1021_v25 }
 0x230   :  { %1100 = vmatprep.subr.mxu1 %v978_v52 }
 0x231   :  { %1101 = vmatpush2.msra.mxu1 %v977_v53 }
 0x232   :  { %1102 = vmatprep.subr.mxu1 %v976_v54 }
 0x233   :  { %1103 = vmatpush2.msra.mxu1 %v975_v55 }
 0x234   :  { %1104 = vmatprep.subr.mxu1 %v974_v58 }
 0x235   :  { %1105 = vmatpush2.msra.mxu1 %v973_v59 }
 0x236   :  { %1106 = vmatprep.subr.mxu1 %v972_v60 }
 0x237   :  { %1107 = vmatpush2.msra.mxu1 %v971_v61 }
 0x238   :  { %1108 = vmatprep.subr.mxu1 %v970_v63 }
 0x239   :  { %1109 = vmatpush2.msra.mxu1 %v969_v1 }
 0x23a   :  { %1110 = vmatprep.subr.mxu1 %v968_v4 }
 0x23b   :  { %1111 = vmatpush2.msra.mxu1 %v967_v6 }
 0x23c   :  { %1112 = vmatprep.subr.mxu1 %v966_v8 }
 0x23d   :  { %1113 = vmatpush2.msra.mxu1 %v965_v15 }
 0x23e   :  { %1114 = vmatprep.subr.mxu1 %v964_v19 }
 0x23f   :  { %1115 = vmatpush2.msra.mxu1 %v963_v22 }
 0x240   :  { %1116 = vmatprep.subr.mxu1 %v962_v26 }
 0x241   :  { %1117 = vmatpush2.msra.mxu1 %v961_v31 }
 0x242   :  { %1118 = vmatprep.subr.mxu1 %v960_v32 }
 0x243   :  { %1119 = vmatpush2.msra.mxu1 %v959_v36 }
 0x244   :  { %1120 = vmatprep.subr.mxu1 %v958_v37 }
 0x245   :  { %1121 = vmatpush2.msra.mxu1 %v957_v47 }
 0x246   :  { %1469 = vmatprep.subr.mxu1 %v2697_v56 }
 0x2be   :  { %v651_v9 = vpop.f32.mrf.mxu1  ;;  %v784_v10 = vpop.f32.mrf.mxu0 }
 0x2bf   :  { %v3420_v14 = vmax.f32 %v651_v9, %v784_v10 }
 0x2c0   :  { %v653_v12 = vpop.f32.mrf.mxu1  ;;  %v786_v13 = vpop.f32.mrf.mxu0 }
 0x2c1   :  { %v885_v29 = vrot.slane %v3420_v14, 4  ;;  %v863_v42 = vrot.slane %v3420_v14, 3  ;;  %v819_v44 = vrot.slane %v3420_v14, 1  ;;  %v841_v62 = vrot.slane %v3420_v14, 2 }
 0x2c2   :  { %v656_v18 = vpop.f32.mrf.mxu1  ;;  %v789_v57 = vpop.f32.mrf.mxu0 }
 0x2c3   :  { %v3437_v24 = vmax.f32 %v656_v18, %v789_v57 }
 0x2c4   :  { %v658_v27 = vpop.f32.mrf.mxu1  ;;  %v791_v28 = vpop.f32.mrf.mxu0 }
 0x2c5   :  { %v886_v30 = vrot.slane %v3437_v24, 4  ;;  %v864_v35 = vrot.slane %v3437_v24, 3  ;;  %v820_v39 = vrot.slane %v3437_v24, 1  ;;  %v842_v51 = vrot.slane %v3437_v24, 2 }
 0x2c6   :  { %v661_v33 = vpop.f32.mrf.mxu1  ;;  %v794_v34 = vpop.f32.mrf.mxu0 }
 0x2c7   :  { %v3460_v3 = vmax.f32 %v661_v33, %v794_v34  ;;  %v887_v38 = vsel %vm884_vm3, %v885_v29, %v886_v30  ;;  %v865_v50 = vsel %vm862_vm4, %v863_v42, %v864_v35  ;;  %v821_v54 = vsel %vm818_vm5, %v819_v44, %v820_v39 }
 0x2c8   :  { %v796_v40 = vpop.f32.mrf.mxu0  ;;  %894 = vrot.lane.b32.xlu1 %v887_v38, %s2698_s20  ;;  %v663_v41 = vpop.f32.mrf.mxu1  ;;  %v843_v4 = vsel %vm840_vm6, %v841_v62, %v842_v51 }
 0x2c9   :  { %v866_v43 = vrot.slane %v3460_v3, 3  ;;  %v822_v45 = vrot.slane %v3460_v3, 1  ;;  %v844_v46 = vrot.slane %v3460_v3, 2  ;;  %v888_v11 = vrot.slane %v3460_v3, 4 }
 0x2ca   :  { %v666_v48 = vpop.f32.mrf.mxu1  ;;  %v799_v49 = vpop.f32.mrf.mxu0 }
 0x2cb   :  { %v3477_v52 = vmax.f32 %v666_v48, %v799_v49  ;;  %v867_v53 = vsel %vm862_vm4, %v864_v35, %v866_v43  ;;  %v823_v55 = vsel %vm818_vm5, %v820_v39, %v822_v45  ;;  %v845_v63 = vsel %vm840_vm6, %v842_v51, %v844_v46 }
 0x2cc   :  { %v668_v58 = vpop.f32.mrf.mxu1  ;;  %v801_v59 = vpop.f32.mrf.mxu0  ;;  %v2677_v60 = vpack.i.bf16 %v867_v53, %v865_v50  ;;  %v2667_v61 = vpack.i.bf16 %v823_v55, %v821_v54  ;;  %v2672_v8 = vpack.i.bf16 %v845_v63, %v843_v4  ;;  %v889_v18 = vsel %vm884_vm3, %v886_v30, %v888_v11 }
 0x2cd   :  { %v846_v5 = vrot.slane %v3477_v52, 2  ;;  %v824_v15 = vrot.slane %v3477_v52, 1  ;;  %v868_v57 = vrot.slane %v3477_v52, 3  ;;  %v890_v27 = vrot.slane %v3477_v52, 4 }
 0x2ce   :  { %2678 = vrot.lane.b32.xlu1 %v2677_v60, %s2699_s5  ;;  %2668 = vrot.lane.b32.xlu0 %v2667_v61, %s2700_s24  ;;  %v671_v0 = vpop.f32.mrf.mxu1  ;;  %v804_v1 = vpop.f32.mrf.mxu0 }
 0x2cf   :  { %v812_v2 = vmax.f32 %v671_v0, %v804_v1  ;;  %v847_v12 = vsel %vm840_vm6, %v844_v46, %v846_v5  ;;  %v825_v21 = vsel %vm818_vm5, %v822_v45, %v824_v15  ;;  %v869_v25 = vsel %vm862_vm4, %v866_v43, %v868_v57 }
 0x2d0   :  { %v673_v6 = vpop.f32.mrf.mxu1  ;;  %v806_v7 = vpop.f32.mrf.mxu0  ;;  %v891_v29 = vsel %vm884_vm3, %v888_v11, %v890_v27 }
 0x2d1   :  { %v826_v9 = vrot.slane %v812_v2, 1  ;;  %v848_v10 = vrot.slane %v812_v2, 2  ;;  %v870_v26 = vrot.slane %v812_v2, 3  ;;  %v892_v30 = vrot.slane %v812_v2, 4  ;;  %v2510_v7 = vld [vmem:[%s3978_s8 + $0x30] sm:$0xff]  }
 0x2d2   :  { %2673 = vrot.lane.b32.xlu0 %v2672_v8, %s2701_s0  ;;  %v2428_v11 = vunpack.c.l.bf16 %v2510_v7 }
 0x2d3   :  { %v849_v13 = vsel %vm840_vm6, %v846_v5, %v848_v10  ;;  %v827_v19 = vsel %vm818_vm5, %v824_v15, %v826_v9  ;;  %v871_v28 = vsel %vm862_vm4, %v868_v57, %v870_v26  ;;  %v893_v31 = vsel %vm884_vm3, %v890_v27, %v892_v30  ;;  %v3565_v26 = vld [vmem:[%s3978_s8 + $0x8] sm:$0xff]  }
 0x2d4   :  { %v2687_v16 = vpack.i.bf16 %v849_v13, %v847_v12  ;;  %v2682_v22 = vpack.i.bf16 %v827_v19, %v825_v21  ;;  %v2429_v10 = vunpack.c.h.bf16 %v2510_v7  ;;  %v2508_v13 = vld [vmem:[%s3978_s8 + $0x20] sm:$0xff]   ;;  %v2506_v21 = vld [vmem:[%s3978_s8 + $0x10] sm:$0xff]  }
 0x2d5   :  { %v2420_v57 = vunpack.c.l.bf16 %v2508_v13  ;;  %v2412_v27 = vunpack.c.l.bf16 %v2506_v21 }
 0x2d6   :  { %896 = vrot.lane.b32.xlu0 %v889_v18, %s2698_s20  ;;  %2688 = vrot.lane.b32.xlu1 %v2687_v16, %s2701_s0  ;;  %v2421_v16 = vunpack.c.h.bf16 %v2508_v13  ;;  %v2507_v18 = vld [vmem:[%s3978_s8 + $0x18] sm:$0xff]  }
 0x2d7   :  { %v2417_v19 = vunpack.c.h.bf16 %v2507_v18 }
 0x2da   :  { %876 = vrot.lane.b32.xlu1 %v869_v25, %s2699_s5  ;;  %2683 = vrot.lane.b32.xlu0 %v2682_v22, %s2700_s24  ;;  %v2416_v22 = vunpack.c.l.bf16 %v2507_v18  ;;  %v2413_v25 = vunpack.c.h.bf16 %v2506_v21  ;;  %v2519_v18 = vld [vmem:[%s3978_s8 + $0x78] sm:$0xff]   ;;  %v2518_v21 = vld [vmem:[%s3978_s8 + $0x70] sm:$0xff]  }
 0x2de   :  { %878 = vrot.lane.b32.xlu1 %v871_v28, %s2699_s5  ;;  %898 = vrot.lane.b32.xlu0 %v891_v29, %s2698_s20  ;;  %v2409_v28 = vunpack.c.h.bf16 %v3565_v26 }
 0x2e2   :  { %900 = vrot.lane.b32.xlu0 %v893_v31, %s2698_s20 }
 0x33a   :  { %v895_v32 = vpop.permute.xlu1 %894 }
 0x33b   :  { %2254 = vmatprep.mubr.msk.f32.mxu0 %vm1043_vm7, %v895_v32 }
 0x340   :  { %v2679_v33 = vpop.permute.xlu1 %2678  ;;  %v2669_v34 = vpop.permute.xlu0 %2668 }
 0x341   :  { %v2680_v35 = vunpack.i.l.bf16 %v2679_v33  ;;  %v2671_v38 = vunpack.i.h.bf16 %v2669_v34  ;;  %v2670_v39 = vunpack.i.l.bf16 %v2669_v34  ;;  %v2681_v42 = vunpack.i.h.bf16 %v2679_v33 }
 0x343   :  { %v921_v36 = vsel %vm920_vm8, %v2680_v35, %v895_v32  ;;  %v907_v48 = vsel %vm906_vm10, %v3420_v14, %v2670_v39  ;;  %v908_v54 = vsel %vm906_vm10, %v3437_v24, %v2671_v38 }
 0x344   :  { %v2674_v37 = vpop.permute.xlu0 %2673  ;;  %1212 = vmatmul.mubr.f32.vlgmr.msra.gmra.mxu0 %v921_v36 }
 0x345   :  { %v2676_v40 = vunpack.i.h.bf16 %v2674_v37  ;;  %v2675_v41 = vunpack.i.l.bf16 %v2674_v37  ;;  %v1031_v37 = vld [vmem:[%s3979_s6] sm:$0x3]  ;;  %s2704_s6 = smov 64  }
 0x347   :  { %v911_v43 = vsel %vm569_vm2, %v2670_v39, %v2675_v41  ;;  %v912_v44 = vsel %vm569_vm2, %v2671_v38, %v2676_v40 }
 0x348   :  { %v897_v45 = vpop.permute.xlu0 %896  ;;  %v2689_v46 = vpop.permute.xlu1 %2688  ;;  %v916_v47 = vsel %vm915_vm9, %v911_v43, %v2680_v35  ;;  %v917_v50 = vsel %vm915_vm9, %v912_v44, %v2681_v42  ;;  %v1040_v43 = vrot.slane %v1031_v37, %v117_v23 }
 0x349   :  { %1122 = vmatprep.mubr.f32.mxu1 %v916_v47  ;;  %2255 = vmatprep.mubr.msk.f32.mxu0 %vm1043_vm7, %v897_v45  ;;  %v922_v49 = vsel %vm920_vm8, %v2681_v42, %v897_v45  ;;  %v2691_v55 = vunpack.i.h.bf16 %v2689_v46  ;;  %v2690_v58 = vunpack.i.l.bf16 %v2689_v46  ;;  %v1036_v42 = vrot.slane %v1031_v37, %v113_v20 }
 0x34a   :  { %1123 = vmatmul.mubr.f32.vlgmr.msra.gmra.mxu1 %v907_v48  ;;  %1218 = vmatmul.mubr.f32.gmra.mxu0 %v922_v49 }
 0x34b   :  { %1128 = vmatprep.mubr.f32.mxu1 %v917_v50 }
 0x34c   :  { %v877_v51 = vpop.permute.xlu1 %876  ;;  %v2684_v53 = vpop.permute.xlu0 %2683 }
 0x34d   :  { %v2686_v59 = vunpack.i.h.bf16 %v2684_v53  ;;  %v2685_v60 = vunpack.i.l.bf16 %v2684_v53 }
 0x34e   :  { %1129 = vmatmul.mubr.f32.gmra.mxu1 %v908_v54 }
 0x34f   :  { %v913_v61 = vsel %vm569_vm2, %v2685_v60, %v2690_v58  ;;  %v914_v14 = vsel %vm569_vm2, %v2686_v59, %v2691_v55  ;;  %v909_v1 = vsel %vm906_vm10, %v3460_v3, %v2685_v60  ;;  %v910_v5 = vsel %vm906_vm10, %v3477_v52, %v2686_v59  ;;  %v2511_v3 = vld [vmem:[%s3978_s8 + $0x38] sm:$0xff]   ;;  %v2509_v52 = vld [vmem:[%s3978_s8 + $0x28] sm:$0xff]  }
 0x350   :  { %v879_v62 = vpop.permute.xlu1 %878  ;;  %v899_v63 = vpop.permute.xlu0 %898  ;;  %v918_v0 = vsel %vm915_vm9, %v913_v61, %v877_v51  ;;  %v2433_v8 = vunpack.c.h.bf16 %v2511_v3  ;;  %v2432_v9 = vunpack.c.l.bf16 %v2511_v3  ;;  %v2425_v12 = vunpack.c.h.bf16 %v2509_v52 }
 0x351   :  { %1134 = vmatprep.mubr.f32.mxu1 %v918_v0  ;;  %2256 = vmatprep.mubr.msk.f32.mxu0 %vm1043_vm7, %v899_v63  ;;  %v923_v24 = vsel %vm920_vm8, %v877_v51, %v899_v63  ;;  %v919_v2 = vsel %vm915_vm9, %v914_v14, %v879_v62  ;;  %v2424_v15 = vunpack.c.l.bf16 %v2509_v52 }
 0x352   :  { %1135 = vmatmul.mubr.f32.gmra.mxu1 %v909_v1  ;;  %1224 = vmatmul.mubr.f32.gmra.mxu0 %v923_v24 }
 0x353   :  { %1140 = vmatprep.mubr.f32.mxu1 %v919_v2  ;;  %1470 = vmatpush1.msra.mxu1 %v2433_v8  ;;  %v2395_v2 = vld [vmem:[%s3980_s7] sm:$0xff]  }
 0x354   :  { %v901_v4 = vpop.permute.xlu0 %900  ;;  %1471 = vmatprep.subr.mxu1 %v2697_v56  ;;  %v2396_v3 = vunpack.c.l.bf16 %v2395_v2  ;;  %v2397_v8 = vunpack.c.h.bf16 %v2395_v2  ;;  %v1740_v2 = vld [vmem:[%s3981_s9 + $0xf8] sm:$0xff] }
 0x355   :  { %2257 = vmatprep.mubr.msk.f32.mxu0 %vm1043_vm7, %v901_v4  ;;  %v924_v6 = vsel %vm920_vm8, %v879_v62, %v901_v4  ;;  %1472 = vmatpush1.msra.mxu1 %v2432_v9  ;;  %v2504_v9 = vld [vmem:[%s3980_s7 + $0x8] sm:$0xff]  }
 0x356   :  { %1141 = vmatmul.mubr.f32.gmra.mxu1 %v910_v5  ;;  %1230 = vmatmul.mubr.f32.gmra.mxu0 %v924_v6  ;;  %v2400_v52 = vunpack.c.l.bf16 %v2504_v9 }
 0x357   :  { %1318 = vmatprep.mubr.f32.mxu0 %v2697_v56  ;;  %1473 = vmatprep.subr.mxu1 %v2697_v56 }
 0x358   :  { %1474 = vmatpush1.msra.mxu1 %v2429_v10  ;;  %v2521_v10 = vld [vmem:[%s3978_s8 + $0x88] sm:$0xff]  }
 0x359   :  { %1475 = vmatprep.subr.mxu1 %v2697_v56  ;;  %v2472_v13 = vunpack.c.l.bf16 %v2521_v10 }
 0x35a   :  { %1476 = vmatpush1.msra.mxu1 %v2428_v11  ;;  %v2473_v11 = vunpack.c.h.bf16 %v2521_v10  ;;  %v1753_v10 = vld [vmem:[%s3981_s9 + $0x160] sm:$0xff] }
 0x35b   :  { %1477 = vmatprep.subr.mxu1 %v2697_v56 }
 0x35c   :  { %1478 = vmatpush1.msra.mxu1 %v2425_v12  ;;  %v2520_v12 = vld [vmem:[%s3978_s8 + $0x80] sm:$0xff]  }
 0x35d   :  { %1479 = vmatprep.subr.mxu1 %v2697_v56 }
 0x35e   :  { %1480 = vmatpush1.msra.mxu1 %v2424_v15  ;;  %v2401_v15 = vunpack.c.h.bf16 %v2504_v9  ;;  %v1722_v9 = vld [vmem:[%s3981_s9 + $0x68] sm:$0xff] }
 0x35f   :  { %1481 = vmatprep.subr.mxu1 %v2697_v56 }
 0x360   :  { %1482 = vmatpush1.msra.mxu1 %v2421_v16  ;;  %v2469_v16 = vunpack.c.h.bf16 %v2520_v12 }
 0x361   :  { %1483 = vmatprep.subr.mxu1 %v2697_v56 }
 0x362   :  { %1484 = vmatpush1.msra.mxu1 %v2420_v57  ;;  %v2468_v57 = vunpack.c.l.bf16 %v2520_v12  ;;  %v1752_v12 = vld [vmem:[%s3981_s9 + $0x158] sm:$0xff] }
 0x363   :  { %1485 = vmatprep.subr.mxu1 %v2697_v56 }
 0x364   :  { %1486 = vmatpush1.msra.mxu1 %v2417_v19  ;;  %v2465_v19 = vunpack.c.h.bf16 %v2519_v18 }
 0x365   :  { %1487 = vmatprep.subr.mxu1 %v2697_v56 }
 0x366   :  { %1488 = vmatpush1.msra.mxu1 %v2416_v22  ;;  %v2464_v22 = vunpack.c.l.bf16 %v2519_v18  ;;  %v1735_v18 = vld [vmem:[%s3981_s9 + $0xd0] sm:$0xff] }
 0x367   :  { %1489 = vmatprep.subr.mxu1 %v2697_v56 }
 0x368   :  { %1490 = vmatpush1.msra.mxu1 %v2413_v25  ;;  %v2461_v25 = vunpack.c.h.bf16 %v2518_v21 }
 0x369   :  { %1491 = vmatprep.subr.mxu1 %v2697_v56 }
 0x36a   :  { %1492 = vmatpush1.msra.mxu1 %v2412_v27  ;;  %v2517_v27 = vld [vmem:[%s3978_s8 + $0x68] sm:$0xff]  }
 0x36b   :  { %1493 = vmatprep.subr.mxu1 %v2697_v56 }
 0x36c   :  { %1494 = vmatpush1.msra.mxu1 %v2409_v28  ;;  %v2460_v28 = vunpack.c.l.bf16 %v2518_v21  ;;  %v1734_v21 = vld [vmem:[%s3981_s9 + $0xc8] sm:$0xff] }
 0x36d   :  { %1495 = vmatprep.subr.mxu1 %v2697_v56 }
 0x404   :  { %v1213_v29 = vpop.f32.mrf.mxu0 }
 0x406   :  { %v1215_v30 = vpop.f32.mrf.mxu0 }
 0x40a   :  { %v1124_v31 = vpop.f32.mrf.mxu1  ;;  %v1219_v32 = vpop.f32.mrf.mxu0 }
 0x40b   :  { %v1125_v61 = vadd.f32 %v1124_v31, %v1036_v42  ;;  %v2456_v31 = vunpack.c.l.bf16 %v2517_v27 }
 0x40c   :  { %v1126_v33 = vpop.f32.mrf.mxu1  ;;  %v1221_v35 = vpop.f32.mrf.mxu0 }
 0x40d   :  { %v1127_v58 = vadd.f32 %v1126_v33, %v1040_v43  ;;  %v1214_v1 = vadd.f32 %v1213_v29, %v1125_v61  ;;  %v2457_v29 = vunpack.c.h.bf16 %v2517_v27  ;;  %v2515_v33 = vld [vmem:[%s3978_s8 + $0x58] sm:$0xff]   ;;  %v1733_v27 = vld [vmem:[%s3981_s9 + $0xc0] sm:$0xff] }
 0x40e   :  { %v1130_v34 = vpop.f32.mrf.mxu1  ;;  %v2448_v37 = vunpack.c.l.bf16 %v2515_v33 }
 0x40f   :  { %v1131_v53 = vadd.f32 %v1130_v34, %v1036_v42  ;;  %v1216_v63 = vadd.f32 %v1215_v30, %v1127_v58  ;;  %v1236_v7 = vmax.f32 %v1214_v1, 0.0  ;;  %v2516_v30 = vld [vmem:[%s3978_s8 + $0x60] sm:$0xff]  }
 0x410   :  { %v1132_v36 = vpop.f32.mrf.mxu1  ;;  %v2452_v34 = vunpack.c.l.bf16 %v2516_v30 }
 0x411   :  { %v1133_v50 = vadd.f32 %v1132_v36, %v1040_v43  ;;  %v1220_v17 = vadd.f32 %v1219_v32, %v1131_v53  ;;  %v1237_v6 = vmax.f32 %v1216_v63, 0.0  ;;  %v2453_v32 = vunpack.c.h.bf16 %v2516_v30  ;;  %v1732_v30 = vld [vmem:[%s3981_s9 + $0xb8] sm:$0xff] }
 0x412   :  { %v1136_v38 = vpop.f32.mrf.mxu1  ;;  %v1225_v39 = vpop.f32.mrf.mxu0  ;;  %v2408_v36 = vunpack.c.l.bf16 %v3565_v26 }
 0x413   :  { %v1137_v48 = vadd.f32 %v1136_v38, %v1036_v42  ;;  %v1222_v20 = vadd.f32 %v1221_v35, %v1133_v50  ;;  %v1238_v5 = vmax.f32 %v1220_v17, 0.0  ;;  %v2449_v35 = vunpack.c.h.bf16 %v2515_v33  ;;  %v2403_v38 = vld [vmem:[%s3978_s8] sm:$0xff]   ;;  %v2522_v50 = vld [vmem:[%s3978_s8 + $0x90] sm:$0xff]  }
 0x414   :  { %v1138_v40 = vpop.f32.mrf.mxu1  ;;  %v1227_v41 = vpop.f32.mrf.mxu0  ;;  %1496 = vmatpush1.msra.mxu1 %v2408_v36  ;;  %v2404_v26 = vunpack.c.l.bf16 %v2403_v38  ;;  %v2477_v53 = vunpack.c.h.bf16 %v2522_v50  ;;  %v1731_v33 = vld [vmem:[%s3981_s9 + $0xb0] sm:$0xff]  ;;  %v1730_v36 = vld [vmem:[%s3981_s9 + $0xa8] sm:$0xff] }
 0x415   :  { %v1139_v46 = vadd.f32 %v1138_v40, %v1040_v43  ;;  %v1226_v14 = vadd.f32 %v1225_v39, %v1137_v48  ;;  %v1239_v4 = vmax.f32 %v1222_v20, 0.0  ;;  %v2514_v39 = vld [vmem:[%s3978_s8 + $0x50] sm:$0xff]   ;;  %v2405_v40 = vunpack.c.h.bf16 %v2403_v38  ;;  %1497 = vmatprep.subr.mxu1 %v2697_v56  ;;  %v1745_v38 = vld [vmem:[%s3981_s9 + $0x120] sm:$0xff] }
 0x416   :  { %v1142_v44 = vpop.f32.mrf.mxu1  ;;  %v1231_v45 = vpop.f32.mrf.mxu0 }
 0x417   :  { %v1143_v47 = vadd.f32 %v1142_v44, %v1036_v42  ;;  %v1228_v59 = vadd.f32 %v1227_v41, %v1139_v46  ;;  %v1240_v24 = vmax.f32 %v1226_v14, 0.0  ;;  %v2445_v41 = vunpack.c.h.bf16 %v2514_v39  ;;  %1498 = vmatpush1.msra.mxu1 %v2405_v40  ;;  %v2523_v44 = vld [vmem:[%s3978_s8 + $0x98] sm:$0xff]   ;;  %v1713_v40 = vld [vmem:[%s3981_s9 + $0x20] sm:$0xff] }
 0x418   :  { %v1144_v49 = vpop.f32.mrf.mxu1  ;;  %v1233_v55 = vpop.f32.mrf.mxu0  ;;  %v2444_v42 = vunpack.c.l.bf16 %v2514_v39  ;;  %1499 = vmatprep.subr.mxu1 %v2697_v56  ;;  %v2481_v46 = vunpack.c.h.bf16 %v2523_v44  ;;  %v2480_v48 = vunpack.c.l.bf16 %v2523_v44  ;;  %v1729_v39 = vld [vmem:[%s3981_s9 + $0xa0] sm:$0xff]  ;;  %v1727_v44 = vld [vmem:[%s3981_s9 + $0x90] sm:$0xff] }
 0x419   :  { %v1145_v51 = vadd.f32 %v1144_v49, %v1040_v43  ;;  %v1232_v54 = vadd.f32 %v1231_v45, %v1143_v47  ;;  %v1241_v0 = vmax.f32 %v1228_v59, 0.0  ;;  %v2513_v43 = vld [vmem:[%s3978_s8 + $0x48] sm:$0xff]   ;;  %1500 = vmatpush1.msra.mxu1 %v2404_v26  ;;  %v2512_v49 = vld [vmem:[%s3978_s8 + $0x40] sm:$0xff]   ;;  %v1728_v26 = vld [vmem:[%s3981_s9 + $0x98] sm:$0xff] }
 0x41a   :  { %v2441_v45 = vunpack.c.h.bf16 %v2513_v43  ;;  %1525 = vmatprep.subr.mxu1 %v2697_v56  ;;  %v2440_v47 = vunpack.c.l.bf16 %v2513_v43  ;;  %v1712_v43 = vld [vmem:[%s3981_s9 + $0x18] sm:$0xff] }
 0x41b   :  { %v1234_v60 = vadd.f32 %v1233_v55, %v1145_v51  ;;  %v1242_v23 = vmax.f32 %v1232_v54, 0.0  ;;  %v2437_v51 = vunpack.c.h.bf16 %v2512_v49  ;;  %v2436_v54 = vunpack.c.l.bf16 %v2512_v49  ;;  %v1726_v49 = vld [vmem:[%s3981_s9 + $0x88] sm:$0xff] }
 0x41c   :  { %1526 = vmatpush2.msra.mxu1 %v2441_v45  ;;  %v2476_v55 = vunpack.c.l.bf16 %v2522_v50  ;;  %v1742_v45 = vld [vmem:[%s3981_s9 + $0x108] sm:$0xff]  ;;  %v1741_v50 = vld [vmem:[%s3981_s9 + $0x100] sm:$0xff] }
 0x41d   :  { %v1243_v62 = vmax.f32 %v1234_v60, 0.0  ;;  %1527 = vmatprep.subr.mxu1 %v2697_v56 }
 0x41e   :  { %1528 = vmatpush2.msra.mxu1 %v2440_v47 }
 0x41f   :  { %1278 = vmatprep.subr.mxu0 %v1243_v62  ;;  %1529 = vmatprep.subr.mxu1 %v2697_v56 }
 0x420   :  { %1279 = vmatpush1.msra.mxu0 %v1242_v23  ;;  %1530 = vmatpush2.msra.mxu1 %v2437_v51  ;;  %v1710_v51 = vld [vmem:[%s3981_s9 + $0x8] sm:$0xff] }
 0x421   :  { %1280 = vmatprep.subr.mxu0 %v1241_v0  ;;  %1531 = vmatprep.subr.mxu1 %v2697_v56 }
 0x422   :  { %1281 = vmatpush1.msra.mxu0 %v1240_v24  ;;  %1532 = vmatpush2.msra.mxu1 %v2436_v54 }
 0x423   :  { %1282 = vmatprep.subr.mxu0 %v1239_v4  ;;  %2524 = vmatprep.subr.mxu1 %v1740_v2 }
 0x424   :  { %1283 = vmatpush1.msra.mxu0 %v1238_v5 }
 0x425   :  { %1284 = vmatprep.subr.mxu0 %v1237_v6 }
 0x426   :  { %1285 = vmatpush1.msra.mxu0 %v1236_v7 }
 0x427   :  { %2258 = vmatmul.mubr.msk.f32.vlgmr.msra.gmra.mxu0 %vm121_vm0, %v2396_v3  ;;  %1366 = vmatprep.subr.mxu0 %v1243_v62  ;;  %v1754_v3 = vld [vmem:[%s3981_s9 + $0x168] sm:$0xff] }
 0x428   :  { %1367 = vmatpush1.msra.mxu0 %v1242_v23  ;;  %1324 = vmatprep.mubr.f32.mxu0 %v2697_v56 }
 0x429   :  { %1368 = vmatprep.subr.mxu0 %v1241_v0 }
 0x42a   :  { %1369 = vmatpush1.msra.mxu0 %v1240_v24  ;;  %v1756_v24 = vld [vmem:[%s3981_s9 + $0x178] sm:$0xff] }
 0x42b   :  { %2259 = vmatmul.mubr.msk.f32.gmra.mxu0 %vm121_vm0, %v2397_v8  ;;  %1370 = vmatprep.subr.mxu0 %v1239_v4  ;;  %v1755_v4 = vld [vmem:[%s3981_s9 + $0x170] sm:$0xff]  ;;  %v1738_v8 = vld [vmem:[%s3981_s9 + $0xe8] sm:$0xff] }
 0x42c   :  { %1371 = vmatpush1.msra.mxu0 %v1238_v5  ;;  %1406 = vmatprep.mubr.f32.mxu0 %v2697_v56  ;;  %v1724_v5 = vld [vmem:[%s3981_s9 + $0x78] sm:$0xff] }
 0x42d   :  { %1372 = vmatprep.subr.mxu0 %v1237_v6  ;;  %v1739_v6 = vld [vmem:[%s3981_s9 + $0xf0] sm:$0xff] }
 0x42e   :  { %1373 = vmatpush1.msra.mxu0 %v1236_v7  ;;  %v1723_v7 = vld [vmem:[%s3981_s9 + $0x70] sm:$0xff] }
 0x42f   :  { %2262 = vmatmul.mubr.msk.f32.vlgmr.msra.gmra.mxu0 %vm121_vm0, %v2400_v52  ;;  %1585 = vmatprep.subr.mxu0 %v2697_v56  ;;  %v1737_v52 = vld [vmem:[%s3981_s9 + $0xe0] sm:$0xff] }
 0x430   :  { %1412 = vmatprep.mubr.f32.mxu0 %v2697_v56  ;;  %1586 = vmatpush1.msra.mxu0 %v2473_v11  ;;  %v1721_v11 = vld [vmem:[%s3981_s9 + $0x60] sm:$0xff] }
 0x431   :  { %1587 = vmatprep.subr.mxu0 %v2697_v56 }
 0x432   :  { %1588 = vmatpush1.msra.mxu0 %v2472_v13  ;;  %v1736_v13 = vld [vmem:[%s3981_s9 + $0xd8] sm:$0xff] }
 0x433   :  { %2263 = vmatmul.mubr.msk.f32.gmra.mxu0 %vm121_vm0, %v2401_v15  ;;  %1589 = vmatprep.subr.mxu0 %v2697_v56  ;;  %v1720_v15 = vld [vmem:[%s3981_s9 + $0x58] sm:$0xff] }
 0x434   :  { %1590 = vmatpush1.msra.mxu0 %v2469_v16  ;;  %v1751_v16 = vld [vmem:[%s3981_s9 + $0x150] sm:$0xff] }
 0x435   :  { %1591 = vmatprep.subr.mxu0 %v2697_v56 }
 0x436   :  { %1592 = vmatpush1.msra.mxu0 %v2468_v57  ;;  %v1719_v57 = vld [vmem:[%s3981_s9 + $0x50] sm:$0xff] }
 0x437   :  { %1593 = vmatprep.subr.mxu0 %v2697_v56 }
 0x438   :  { %1594 = vmatpush1.msra.mxu0 %v2465_v19  ;;  %v1750_v19 = vld [vmem:[%s3981_s9 + $0x148] sm:$0xff] }
 0x439   :  { %1595 = vmatprep.subr.mxu0 %v2697_v56 }
 0x43a   :  { %1596 = vmatpush1.msra.mxu0 %v2464_v22  ;;  %v1718_v22 = vld [vmem:[%s3981_s9 + $0x48] sm:$0xff] }
 0x43b   :  { %1597 = vmatprep.subr.mxu0 %v2697_v56 }
 0x43c   :  { %1598 = vmatpush1.msra.mxu0 %v2461_v25  ;;  %v1749_v25 = vld [vmem:[%s3981_s9 + $0x140] sm:$0xff] }
 0x43d   :  { %1599 = vmatprep.subr.mxu0 %v2697_v56 }
 0x43e   :  { %1600 = vmatpush1.msra.mxu0 %v2460_v28  ;;  %v1717_v28 = vld [vmem:[%s3981_s9 + $0x40] sm:$0xff] }
 0x43f   :  { %1601 = vmatprep.subr.mxu0 %v2697_v56 }
 0x440   :  { %1602 = vmatpush1.msra.mxu0 %v2457_v29  ;;  %v1748_v29 = vld [vmem:[%s3981_s9 + $0x138] sm:$0xff] }
 0x441   :  { %1603 = vmatprep.subr.mxu0 %v2697_v56 }
 0x442   :  { %1604 = vmatpush1.msra.mxu0 %v2456_v31  ;;  %v1716_v31 = vld [vmem:[%s3981_s9 + $0x38] sm:$0xff] }
 0x443   :  { %1605 = vmatprep.subr.mxu0 %v2697_v56 }
 0x444   :  { %1606 = vmatpush1.msra.mxu0 %v2453_v32  ;;  %v1747_v32 = vld [vmem:[%s3981_s9 + $0x130] sm:$0xff] }
 0x445   :  { %1607 = vmatprep.subr.mxu0 %v2697_v56 }
 0x446   :  { %1608 = vmatpush1.msra.mxu0 %v2452_v34  ;;  %v1715_v34 = vld [vmem:[%s3981_s9 + $0x30] sm:$0xff] }
 0x447   :  { %1609 = vmatprep.subr.mxu0 %v2697_v56 }
 0x448   :  { %1610 = vmatpush1.msra.mxu0 %v2449_v35  ;;  %v1746_v35 = vld [vmem:[%s3981_s9 + $0x128] sm:$0xff] }
 0x449   :  { %1611 = vmatprep.subr.mxu0 %v2697_v56 }
 0x44a   :  { %1612 = vmatpush1.msra.mxu0 %v2448_v37  ;;  %v1714_v37 = vld [vmem:[%s3981_s9 + $0x28] sm:$0xff] }
 0x44b   :  { %1613 = vmatprep.subr.mxu0 %v2697_v56 }
 0x44c   :  { %1614 = vmatpush1.msra.mxu0 %v2445_v41  ;;  %v1744_v41 = vld [vmem:[%s3981_s9 + $0x118] sm:$0xff] }
 0x44d   :  { %1615 = vmatprep.subr.mxu0 %v2697_v56 }
 0x44e   :  { %1616 = vmatpush1.msra.mxu0 %v2444_v42  ;;  %v1743_v42 = vld [vmem:[%s3981_s9 + $0x110] sm:$0xff] }
 0x44f   :  { %1641 = vmatprep.subr.mxu0 %v2697_v56 }
 0x450   :  { %1642 = vmatpush2.msra.mxu0 %v2481_v46  ;;  %v1711_v46 = vld [vmem:[%s3981_s9 + $0x10] sm:$0xff] }
 0x451   :  { %1643 = vmatprep.subr.mxu0 %v2697_v56 }
 0x452   :  { %1644 = vmatpush2.msra.mxu0 %v2480_v48 }
 0x453   :  { %1645 = vmatprep.subr.mxu0 %v2697_v56 }
 0x454   :  { %1646 = vmatpush2.msra.mxu0 %v2477_v53 }
 0x455   :  { %1647 = vmatprep.subr.mxu0 %v2697_v56 }
 0x456   :  { %1648 = vmatpush2.msra.mxu0 %v2476_v55  ;;  %v1725_v55 = vld [vmem:[%s3981_s9 + $0x80] sm:$0xff] }
 0x457   :  { %1839 = vmatprep.subr.mxu0 %v2697_v56 }
 0x4e7   :  { %v1320_v58 = vpop.f32.mrf.mxu0 }
 0x4e9   :  { %v1322_v59 = vpop.f32.mrf.mxu0 }
 0x4eb   :  { %v1326_v60 = vpop.f32.mrf.mxu0 }
 0x4ed   :  { %v1328_v61 = vpop.f32.mrf.mxu0 }
 0x4ef   :  { %v1408_v14 = vpop.f32.mrf.mxu0 }
 0x4f0   :  { %v1419_v17 = vmax.f32 %v1320_v58, %v1408_v14  ;;  %v1758_v58 = vld [vmem:[%s3981_s9 + $0x188] sm:$0xff] }
 0x4f1   :  { %v1410_v20 = vpop.f32.mrf.mxu0 }
 0x4f2   :  { %v1420_v62 = vmax.f32 %v1322_v59, %v1410_v20  ;;  %v1709_v59 = vld [vmem:[%s3981_s9] sm:$0xff] }
 0x4f3   :  { %v1414_v23 = vpop.f32.mrf.mxu0 }
 0x4f4   :  { %2264 = vmatprep.mubr.msk.f32.mxu1 %vm121_vm0, %v1420_v62  ;;  %2286 = vmatprep.mubr.msk.f32.mxu0 %vm121_vm0, %v1420_v62  ;;  %v1421_v1 = vmax.f32 %v1326_v60, %v1414_v23  ;;  %v1757_v62 = vld [vmem:[%s3981_s9 + $0x180] sm:$0xff]  ;;  %s2703_s9 = smov 112  }
 0x4f5   :  { %v1416_v63 = vpop.f32.mrf.mxu0  ;;  %1534 = vmatmul.mubr.f32.vlgmr.msra.gmra.mxu1 %v1419_v17  ;;  %1650 = vmatmul.mubr.f32.vlgmr.msra.gmra.mxu0 %v1419_v17 }
 0x4f6   :  { %v1422_v0 = vmax.f32 %v1328_v61, %v1416_v63  ;;  %1840 = vmatpush1.msra.mxu0 %v1756_v24  ;;  %2525 = vmatpush3.msra.mxu1 %v1724_v5 }
 0x4f7   :  { %1841 = vmatprep.subr.mxu0 %v2697_v56  ;;  %2526 = vmatprep.subr.mxu1 %v1739_v6 }
 0x4f8   :  { %2265 = vmatprep.mubr.msk.f32.mxu1 %vm121_vm0, %v1422_v0  ;;  %2287 = vmatprep.mubr.msk.f32.mxu0 %vm121_vm0, %v1422_v0 }
 0x4f9   :  { %1539 = vmatmul.mubr.f32.gmra.mxu1 %v1421_v1  ;;  %1655 = vmatmul.mubr.f32.gmra.mxu0 %v1421_v1 }
 0x4fa   :  { %1842 = vmatpush1.msra.mxu0 %v1755_v4  ;;  %2527 = vmatpush3.msra.mxu1 %v1723_v7 }
 0x4fb   :  { %1843 = vmatprep.subr.mxu0 %v2697_v56  ;;  %2528 = vmatprep.subr.mxu1 %v1738_v8 }
 0x4fc   :  { %1844 = vmatpush1.msra.mxu0 %v1754_v3  ;;  %2529 = vmatpush3.msra.mxu1 %v1722_v9 }
 0x4fd   :  { %1845 = vmatprep.subr.mxu0 %v2697_v56  ;;  %2530 = vmatprep.subr.mxu1 %v1737_v52 }
 0x4fe   :  { %1846 = vmatpush1.msra.mxu0 %v1753_v10  ;;  %2531 = vmatpush3.msra.mxu1 %v1721_v11 }
 0x4ff   :  { %1847 = vmatprep.subr.mxu0 %v2697_v56  ;;  %2532 = vmatprep.subr.mxu1 %v1736_v13 }
 0x500   :  { %1848 = vmatpush1.msra.mxu0 %v1752_v12  ;;  %2533 = vmatpush3.msra.mxu1 %v1720_v15 }
 0x501   :  { %1849 = vmatprep.subr.mxu0 %v2697_v56  ;;  %2534 = vmatprep.subr.mxu1 %v1735_v18 }
 0x502   :  { %1850 = vmatpush1.msra.mxu0 %v1751_v16  ;;  %2535 = vmatpush3.msra.mxu1 %v1719_v57 }
 0x503   :  { %1851 = vmatprep.subr.mxu0 %v2697_v56  ;;  %2536 = vmatprep.subr.mxu1 %v1734_v21 }
 0x504   :  { %1852 = vmatpush1.msra.mxu0 %v1750_v19  ;;  %2537 = vmatpush3.msra.mxu1 %v1718_v22 }
 0x505   :  { %1853 = vmatprep.subr.mxu0 %v2697_v56  ;;  %2538 = vmatprep.subr.mxu1 %v1733_v27 }
 0x506   :  { %1854 = vmatpush1.msra.mxu0 %v1749_v25  ;;  %2539 = vmatpush3.msra.mxu1 %v1717_v28 }
 0x507   :  { %1855 = vmatprep.subr.mxu0 %v2697_v56  ;;  %2540 = vmatprep.subr.mxu1 %v1732_v30 }
 0x508   :  { %1856 = vmatpush1.msra.mxu0 %v1748_v29  ;;  %2541 = vmatpush3.msra.mxu1 %v1716_v31 }
 0x509   :  { %1857 = vmatprep.subr.mxu0 %v2697_v56  ;;  %2542 = vmatprep.subr.mxu1 %v1731_v33 }
 0x50a   :  { %1858 = vmatpush1.msra.mxu0 %v1747_v32  ;;  %2543 = vmatpush3.msra.mxu1 %v1715_v34 }
 0x50b   :  { %1859 = vmatprep.subr.mxu0 %v2697_v56  ;;  %2544 = vmatprep.subr.mxu1 %v1730_v36 }
 0x50c   :  { %1860 = vmatpush1.msra.mxu0 %v1746_v35  ;;  %2545 = vmatpush3.msra.mxu1 %v1714_v37 }
 0x50d   :  { %1861 = vmatprep.subr.mxu0 %v2697_v56  ;;  %2546 = vmatprep.subr.mxu1 %v1729_v39 }
 0x50e   :  { %1862 = vmatpush1.msra.mxu0 %v1745_v38  ;;  %2547 = vmatpush3.msra.mxu1 %v1713_v40 }
 0x50f   :  { %1863 = vmatprep.subr.mxu0 %v2697_v56  ;;  %2548 = vmatprep.subr.mxu1 %v1728_v26 }
 0x510   :  { %1864 = vmatpush1.msra.mxu0 %v1744_v41  ;;  %2549 = vmatpush3.msra.mxu1 %v1712_v43  ;;  %v1914_v41 = vld [vmem:[%s3982_s11] sm:$0xf] }
 0x511   :  { %1865 = vmatprep.subr.mxu0 %v2697_v56  ;;  %2550 = vmatprep.subr.mxu1 %v1727_v44  ;;  %v1915_v43 = vunpack.c.l.bf16 %v1914_v41 }
 0x512   :  { %1866 = vmatpush1.msra.mxu0 %v1743_v42  ;;  %2551 = vmatpush3.msra.mxu1 %v1711_v46  ;;  %v2015_v46 = vld [vmem:[%s3983_s12 + $0x68] sm:$0xff] }
 0x513   :  { %1867 = vmatprep.subr.mxu0 %v2697_v56  ;;  %2552 = vmatprep.subr.mxu1 %v1726_v49  ;;  %v2012_v49 = vld [vmem:[%s3983_s12 + $0x50] sm:$0xff] }
 0x514   :  { %1868 = vmatpush1.msra.mxu0 %v1742_v45  ;;  %2553 = vmatpush3.msra.mxu1 %v1710_v51  ;;  %v2016_v45 = vld [vmem:[%s3983_s12 + $0x70] sm:$0xff]  ;;  %v2010_v51 = vld [vmem:[%s3983_s12 + $0x40] sm:$0xff] }
 0x515   :  { %1869 = vmatprep.subr.mxu0 %v2697_v56  ;;  %2554 = vmatprep.subr.mxu1 %v1725_v55  ;;  %v2007_v55 = vld [vmem:[%s3983_s12 + $0x28] sm:$0xff] }
 0x516   :  { %1870 = vmatpush1.msra.mxu0 %v1741_v50  ;;  %2555 = vmatpush3.msra.mxu1 %v1709_v59  ;;  %v2011_v50 = vld [vmem:[%s3983_s12 + $0x48] sm:$0xff]  ;;  %v2005_v59 = vld [vmem:[%s3983_s12 + $0x18] sm:$0xff] }
 0x517   :  { %1899 = vmatprep.subr.mxu0 %v2697_v56  ;;  %2593 = vmatprep.subr.mxu1 %v2697_v56 }
 0x518   :  { %1900 = vmatpush2.msra.mxu0 %v1758_v58  ;;  %v2006_v58 = vld [vmem:[%s3983_s12 + $0x20] sm:$0xff] }
 0x519   :  { %1901 = vmatprep.subr.mxu0 %v2697_v56 }
 0x51a   :  { %1902 = vmatpush2.msra.mxu0 %v1757_v62  ;;  %v2108_v62 = vld [vmem:[%s3984_s14 + $0x48] sm:$0xff] }
 0x51b   :  { %2633 = vmatprep.subr.mxu0 %v2697_v56 }
 0x5b5   :  { %v1535_v47 = vpop.f32.mrf.mxu1  ;;  %v1651_v48 = vpop.f32.mrf.mxu0 }
 0x5b6   :  { %v1660_v60 = vmax.f32 %v1535_v47, %v1651_v48  ;;  %v2014_v47 = vld [vmem:[%s3983_s12 + $0x60] sm:$0xff]  ;;  %v2013_v48 = vld [vmem:[%s3983_s12 + $0x58] sm:$0xff] }
 0x5b7   :  { %v1537_v53 = vpop.f32.mrf.mxu1  ;;  %v1653_v54 = vpop.f32.mrf.mxu0 }
 0x5b8   :  { %v1673_v63 = vrot.slane %v1660_v60, 2  ;;  %v1664_v1 = vrot.slane %v1660_v60, 1  ;;  %v1682_v3 = vrot.slane %v1660_v60, 3  ;;  %v1691_v9 = vrot.slane %v1660_v60, 4  ;;  %v2009_v53 = vld [vmem:[%s3983_s12 + $0x38] sm:$0xff]  ;;  %v2008_v54 = vld [vmem:[%s3983_s12 + $0x30] sm:$0xff] }
 0x5b9   :  { %v1540_v61 = vpop.f32.mrf.mxu1  ;;  %v1656_v14 = vpop.f32.mrf.mxu0 }
 0x5ba   :  { %v1661_v20 = vmax.f32 %v1540_v61, %v1656_v14  ;;  %v2003_v61 = vld [vmem:[%s3983_s12 + $0x8] sm:$0xff]  ;;  %v2002_v14 = vld [vmem:[%s3983_s12] sm:$0xff] }
 0x5bb   :  { %v1542_v17 = vpop.f32.mrf.mxu1  ;;  %v1658_v23 = vpop.f32.mrf.mxu0 }
 0x5bc   :  { %v1674_v0 = vrot.slane %v1661_v20, 2  ;;  %v1665_v24 = vrot.slane %v1661_v20, 1  ;;  %v1683_v6 = vrot.slane %v1661_v20, 3  ;;  %v1692_v7 = vrot.slane %v1661_v20, 4  ;;  %v2107_v17 = vld [vmem:[%s3984_s14 + $0x40] sm:$0xff]  ;;  %v2106_v23 = vld [vmem:[%s3984_s14 + $0x38] sm:$0xff] }
 0x5be   :  { %v1675_v2 = vsel %vm840_vm6, %v1673_v63, %v1674_v0  ;;  %v1666_v4 = vsel %vm818_vm5, %v1664_v1, %v1665_v24  ;;  %v1684_v8 = vsel %vm862_vm4, %v1682_v3, %v1683_v6  ;;  %v1693_v10 = vsel %vm884_vm3, %v1691_v9, %v1692_v7  ;;  %v2105_v63 = vld [vmem:[%s3984_s14 + $0x30] sm:$0xff]  ;;  %v2103_v1 = vld [vmem:[%s3984_s14 + $0x20] sm:$0xff] }
 0x5bf   :  { %1676 = vrot.lane.b32.xlu0 %v1675_v2, %s2702_s22  ;;  %v2692_v5 = vpack.i.bf16 %v1665_v24, %v1666_v4  ;;  %v2102_v24 = vld [vmem:[%s3984_s14 + $0x18] sm:$0xff]  ;;  %v2290_v2 = vld [vmem:[%s3985_s10] ss:$0 sm:$0xff] }
 0x5c0   :  { %v2099_v9 = vld [vmem:[%s3984_s14] sm:$0xff] }
 0x5c1   :  { %2693 = vrot.lane.b32.xlu1 %v2692_v5, %s2698_s20 }
 0x5c3   :  { %1678 = vrot.lane.b32.xlu0 %v1674_v0, %s2702_s22  ;;  %v2104_v0 = vld [vmem:[%s3984_s14 + $0x28] sm:$0xff] }
 0x5c5   :  { %1685 = vrot.lane.b32.xlu1 %v1684_v8, %s2703_s9  ;;  %v2100_v8 = vld [vmem:[%s3984_s14 + $0x8] sm:$0xff] }
 0x5c7   :  { %1694 = vrot.lane.b32.xlu0 %v1693_v10, %s2704_s6  ;;  %v2293_v10 = vld [vmem:[%s3986_s13] ss:$0 sm:$0xff] }
 0x5c9   :  { %1687 = vrot.lane.b32.xlu1 %v1683_v6, %s2703_s9 }
 0x5cd   :  { %1696 = vrot.lane.b32.xlu1 %v1692_v7, %s2704_s6  ;;  %v2101_v7 = vld [vmem:[%s3984_s14 + $0x10] sm:$0xff] }
 0x631   :  { %v1677_v52 = vpop.permute.xlu0 %1676 }
 0x633   :  { %v2694_v11 = vpop.permute.xlu1 %2693 }
 0x634   :  { %v2695_v12 = vunpack.i.l.bf16 %v2694_v11  ;;  %v2696_v16 = vunpack.i.h.bf16 %v2694_v11 }
 0x635   :  { %v1679_v13 = vpop.permute.xlu0 %1678 }
 0x636   :  { %v1702_v15 = vsel %vm121_vm0, %v2695_v12, %v1677_v52  ;;  %v1700_v21 = vsel %vm920_vm8, %v1660_v60, %v2695_v12  ;;  %v1703_v25 = vsel %vm121_vm0, %v2696_v16, %v1679_v13  ;;  %v1701_v29 = vsel %vm920_vm8, %v1661_v20, %v2696_v16  ;;  %v2004_v60 = vld [vmem:[%s3983_s12 + $0x10] sm:$0xff] }
 0x637   :  { %v1686_v18 = vpop.permute.xlu1 %1685  ;;  %v2109_v20 = vld [vmem:[%s3984_s14 + $0x50] sm:$0xf]  ;;  %vm2024_vm0 = vcmask 982016  }
 0x638   :  { %v1705_v57 = vsel %vm1704_vm11, %v1702_v15, %v1686_v18  ;;  %v2295_v15 = vld [vmem:[%s3987_s15] ss:$0 sm:$0xff] }
 0x639   :  { %v1695_v19 = vpop.permute.xlu0 %1694  ;;  %1828 = vmatprep.mubr.f32.mxu1 %v1705_v57 }
 0x63a   :  { %v1707_v22 = vsel %vm285_vm1, %v1686_v18, %v1695_v19  ;;  %1829 = vmatmul.mubr.f32.vlgmr.msra.gmra.mxu1 %v1700_v21  ;;  %2288 = vmatprep.mubr.msk.f32.mxu0 %vm1759_vm12, %v1695_v19 }
 0x63b   :  { %1904 = vmatmul.mubr.f32.vlgmr.msra.gmra.mxu0 %v1707_v22  ;;  %v1688_v27 = vpop.permute.xlu1 %1687 }
 0x63c   :  { %v1706_v28 = vsel %vm1704_vm11, %v1703_v25, %v1688_v27  ;;  %2634 = vmatpush3.msk.msra.mxu0 %vm884_vm3, %v2109_v20 }
 0x63d   :  { %1833 = vmatprep.mubr.f32.mxu1 %v1706_v28  ;;  %2635 = vmatprep.subr.mxu0 %v2697_v56 }
 0x63e   :  { %1834 = vmatmul.mubr.f32.gmra.mxu1 %v1701_v29  ;;  %2636 = vmatpush3.msra.mxu0 %v2108_v62 }
 0x63f   :  { %v1697_v30 = vpop.permute.xlu1 %1696  ;;  %2597 = vmatprep.mubr.msk.f32.mxu1 %vm2705_vm13, %v2697_v56  ;;  %2637 = vmatprep.subr.mxu0 %v2697_v56 }
 0x640   :  { %2289 = vmatprep.mubr.msk.f32.mxu0 %vm1759_vm12, %v1697_v30  ;;  %v1708_v31 = vsel %vm285_vm1, %v1688_v27, %v1697_v30  ;;  %2638 = vmatpush3.msra.mxu0 %v2107_v17 }
 0x641   :  { %1909 = vmatmul.mubr.f32.gmra.mxu0 %v1708_v31  ;;  %2639 = vmatprep.subr.mxu0 %v2697_v56 }
 0x642   :  { %2655 = vmatprep.mubr.msk.f32.mxu0 %vm2705_vm13, %v2697_v56  ;;  %2640 = vmatpush3.msra.mxu0 %v2106_v23 }
 0x643   :  { %2641 = vmatprep.subr.mxu0 %v2697_v56 }
 0x644   :  { %2642 = vmatpush3.msra.mxu0 %v2105_v63 }
 0x645   :  { %2643 = vmatprep.subr.mxu0 %v2697_v56 }
 0x646   :  { %2644 = vmatpush3.msra.mxu0 %v2104_v0 }
 0x647   :  { %2645 = vmatprep.subr.mxu0 %v2697_v56 }
 0x648   :  { %2646 = vmatpush3.msra.mxu0 %v2103_v1 }
 0x649   :  { %2647 = vmatprep.subr.mxu0 %v2697_v56 }
 0x64a   :  { %2648 = vmatpush3.msra.mxu0 %v2102_v24 }
 0x64b   :  { %2649 = vmatprep.subr.mxu0 %v2697_v56 }
 0x64c   :  { %2650 = vmatpush3.msra.mxu0 %v2101_v7 }
 0x64d   :  { %2651 = vmatprep.subr.mxu0 %v2697_v56 }
 0x64e   :  { %2652 = vmatpush3.msra.mxu0 %v2100_v8 }
 0x64f   :  { %2653 = vmatprep.subr.mxu0 %v2697_v56 }
 0x650   :  { %2654 = vmatpush3.msra.mxu0 %v2099_v9 }
 0x6fa   :  { %v2556_v32 = vpop.f32.mrf.mxu1 }
 0x6fb   :  { %v1905_v33 = vpop.f32.mrf.mxu0 }
 0x6fc   :  { %v2557_v34 = vpop.f32.mrf.mxu1 }
 0x6fd   :  { %v1907_v35 = vpop.f32.mrf.mxu0  ;;  %v2558_v38 = vadd.f32 %v2557_v34, %v2556_v32 }
 0x6fe   :  { %v2559_v36 = vpop.f32.mrf.mxu1 }
 0x6ff   :  { %v1906_v44 = vadd.f32 %v2558_v38, %v1905_v33 }
 0x700   :  { %v2560_v37 = vpop.f32.mrf.mxu1 }
 0x701   :  { %v2561_v39 = vadd.f32 %v2560_v37, %v2559_v36  ;;  %v1910_v40 = vpop.f32.mrf.mxu0 }
 0x703   :  { %v1911_v26 = vadd.f32 %v2561_v39, %v1910_v40  ;;  %v1912_v42 = vpop.f32.mrf.mxu0 }
 0x705   :  { %2594 = vmatpush3.msk.msra.mxu1 %vm1927_vm14, %v1911_v26 }
 0x706   :  { %2595 = vmatprep.subr.mxu1 %v2697_v56 }
 0x707   :  { %2596 = vmatpush3.msra.mxu1 %v1906_v44 }
 0x708   :  { %2598 = vmatmul.mubr.msk.f32.vlgmr.msra.gmra.mxu1 %vm1923_vm15, %v1915_v43  ;;  %2600 = vmatprep.subr.mxu1 %v2697_v56 }
 0x709   :  { %2601 = vmatpush3.msra.mxu1 %v2016_v45  ;;  %2630 = vmatprep.mubr.msk.f32.mxu1 %vm2705_vm13, %v2697_v56 }
 0x70a   :  { %2602 = vmatprep.subr.mxu1 %v2697_v56 }
 0x70b   :  { %2603 = vmatpush3.msra.mxu1 %v2015_v46 }
 0x70c   :  { %2604 = vmatprep.subr.mxu1 %v2697_v56 }
 0x70d   :  { %2605 = vmatpush3.msra.mxu1 %v2014_v47 }
 0x70e   :  { %2606 = vmatprep.subr.mxu1 %v2697_v56 }
 0x70f   :  { %2607 = vmatpush3.msra.mxu1 %v2013_v48 }
 0x710   :  { %2608 = vmatprep.subr.mxu1 %v2697_v56 }
 0x711   :  { %2609 = vmatpush3.msra.mxu1 %v2012_v49 }
 0x712   :  { %2610 = vmatprep.subr.mxu1 %v2697_v56 }
 0x713   :  { %2611 = vmatpush3.msra.mxu1 %v2011_v50 }
 0x714   :  { %2612 = vmatprep.subr.mxu1 %v2697_v56 }
 0x715   :  { %2613 = vmatpush3.msra.mxu1 %v2010_v51 }
 0x716   :  { %2614 = vmatprep.subr.mxu1 %v2697_v56 }
 0x717   :  { %2615 = vmatpush3.msra.mxu1 %v2009_v53 }
 0x718   :  { %2616 = vmatprep.subr.mxu1 %v2697_v56 }
 0x719   :  { %2617 = vmatpush3.msra.mxu1 %v2008_v54 }
 0x71a   :  { %2618 = vmatprep.subr.mxu1 %v2697_v56 }
 0x71b   :  { %2619 = vmatpush3.msra.mxu1 %v2007_v55 }
 0x71c   :  { %2620 = vmatprep.subr.mxu1 %v2697_v56 }
 0x71d   :  { %2621 = vmatpush3.msra.mxu1 %v2006_v58 }
 0x71e   :  { %2622 = vmatprep.subr.mxu1 %v2697_v56 }
 0x71f   :  { %2623 = vmatpush3.msra.mxu1 %v2005_v59 }
 0x720   :  { %2624 = vmatprep.subr.mxu1 %v2697_v56 }
 0x721   :  { %2625 = vmatpush3.msra.mxu1 %v2004_v60 }
 0x722   :  { %2626 = vmatprep.subr.mxu1 %v2697_v56 }
 0x723   :  { %2627 = vmatpush3.msra.mxu1 %v2003_v61 }
 0x724   :  { %2628 = vmatprep.subr.mxu1 %v2697_v56 }
 0x725   :  { %2629 = vmatpush3.msra.mxu1 %v2002_v14 }
 0x7c8   :  { %v1997_v4 = vpop.f32.mrf.mxu1 }
 0x7c9   :  { %v1998_v5 = vadd.f32 %v2290_v2, %v1997_v4 }
 0x7ca   :  { %v2599_v6 = vpop.f32.mrf.mxu1 }
 0x7cb   :  { %v2001_v3 = vmax.f32 %v1998_v5, 0.0 }
 0x7cd   :  { %2631 = vmatmul.mubr.msk.f32.vlgmr.msra.gmra.mxu1 %vm2024_vm0, %v2001_v3 }
 0x88d   :  { %v2094_v52 = vpop.f32.mrf.mxu1 }
 0x88e   :  { %v2095_v11 = vadd.f32 %v2293_v10, %v2094_v52 }
 0x88f   :  { %v2632_v12 = vpop.f32.mrf.mxu1 }
 0x890   :  { %v2098_v13 = vmax.f32 %v2095_v11, 0.0 }
 0x892   :  { %2656 = vmatmul.mubr.msk.f32.vlgmr.msra.gmra.mxu0 %vm906_vm10, %v2098_v13 }
 0x952   :  { %v2189_v16 = vpop.f32.mrf.mxu0 }
 0x953   :  { %v2190_v18 = vadd.f32 %v2295_v15, %v2189_v16 }
 0x954   :  { %v2657_v57 = vpop.f32.mrf.mxu0 }
 0x955   :  { %2193 = vst [vmem:[%s3988_s16] sm:$0xff] %v2190_v18 }

</bundles_post_ra>
